<compile_context>
chip_gen: v6e
topology: v6e:2x2x1
jax: 0.10.0
libtpu: 0.0.40
codegen_flags: <defaults>
</compile_context>

<pallas_src>
import jax
import jax.numpy as jnp
import numpy as np
from jax import lax
from jax.experimental import pallas as pl
from jax.experimental.pallas import tpu as pltpu

INPUT_SIZE = 23
HIDDEN = 64
NUM_LAYERS = 2  # hard-wired below: layer 1 then layer 2 per timestep


def _lstm_kernel(x_ref,       # (T, BB, I)   f32, time-major batch chunk
                 wih1_ref,    # (I, 4H)      bf16 (g-quarter pre-scaled x2)
                 whh1_ref,    # (H, 4H)      bf16 (g-quarter pre-scaled x2)
                 b1_ref,      # (1, 4H)      f32  = b_ih1 + b_hh1 (g-quarter x2)
                 wih2_ref,    # (H, 4H)      bf16 (g-quarter pre-scaled x2)
                 whh2_ref,    # (H, 4H)      bf16 (g-quarter pre-scaled x2)
                 b2_ref,      # (1, 4H)      f32  = b_ih2 + b_hh2 (g-quarter x2)
                 wfc_ref,     # (1, H)       f32
                 bfc_ref,     # (1, 1)       f32
                 out_ref,     # (BB, 1)      f32
                 xproj_ref):  # (T, BB, 4H)  f32 VMEM scratch
    T, BB, I = x_ref.shape
    H = whh1_ref.shape[0]

    # ---- Prologue: layer-1 input projection for ALL timesteps in one matmul.
    # x stays f32 in VMEM so the (T,BB,I)->(T*BB,I) collapse (and the split
    # back) is a layout no-op (BB % 8 == 0); operands are cast to bf16 only
    # for the MXU push. Bias b1 folded in once.
    # TODO(synk): chunk this prologue / the xproj scratch over T for very long
    # sequences (v7x has only 64 MiB physical VMEM); fine for small/medium T.
    x_flat = x_ref[...].reshape(T * BB, I).astype(jnp.bfloat16)
    proj = jnp.dot(x_flat, wih1_ref[...], preferred_element_type=jnp.float32)
    xproj_ref[...] = (proj + b1_ref[...]).reshape(T, BB, 4 * H)

    # Hoisted loop invariants (JAX does not CSE broadcast_in_dim / reloads).
    whh1 = whh1_ref[...]
    wih2 = wih2_ref[...]
    whh2 = whh2_ref[...]
    b2b = jnp.broadcast_to(b2_ref[...], (BB, 4 * H))

    def gates_to_state(g, c_prev):
        # The g-gate (3rd quarter) columns of the weights/biases were
        # pre-scaled by 2 host-side, so a SINGLE tanh push over the whole
        # (BB, 4H) slab yields all four PyTorch gates [i|f|g|o]:
        #   sigmoid(z) = 0.5*(tanh(0.5*z)+1),   tanh(z) = tanh(0.5*(2*z)).
        t = jnp.tanh(0.5 * g)
        i_g = 0.5 * (t[:, 0:H] + 1.0)
        f_g = 0.5 * (t[:, H:2 * H] + 1.0)
        g_g = t[:, 2 * H:3 * H]
        o_g = 0.5 * (t[:, 3 * H:4 * H] + 1.0)
        c_new = f_g * c_prev + i_g * g_g
        h_new = o_g * jnp.tanh(c_new)
        return h_new, c_new

    def step(t, carry):
        h1, c1, h2, c2 = carry
        # h2(t-1) @ W_hh2 depends only on the previous step's state: issue its
        # MXU push first so it overlaps layer-1's gate nonlinearities.
        g2_rec = jnp.dot(h2.astype(jnp.bfloat16), whh2,
                         preferred_element_type=jnp.float32)
        # Layer 1: precomputed input projection + the recurrent dot only.
        g1 = xproj_ref[t] + jnp.dot(h1.astype(jnp.bfloat16), whh1,
                                    preferred_element_type=jnp.float32)
        h1, c1 = gates_to_state(g1, c1)
        # Layer 2: split dots (no concat / lane shuffle on the critical path).
        g2 = g2_rec + jnp.dot(h1.astype(jnp.bfloat16), wih2,
                              preferred_element_type=jnp.float32) + b2b
        h2, c2 = gates_to_state(g2, c2)
        return (h1, c1, h2, c2)

    z = jnp.zeros((BB, H), jnp.float32)
    # Cross-step visibility for the LLO scheduler (overlap t+1 layer-1 dot
    # with t's layer-2 gates); full unroll for short sequences.
    unroll = True if T <= 32 else 8
    _, _, h2, _ = lax.fori_loop(0, T, step, (z, z, z, z), unroll=unroll)

    # Epilogue: Linear(H -> 1) + sigmoid on the last-layer final hidden state.
    # A (BB,64)x(64,1) MXU dot wastes all but one output lane; use a VPU
    # multiply + lane reduce instead (one-off).
    logits = jnp.sum(h2 * wfc_ref[...], axis=1, keepdims=True) + bfc_ref[...]
    out_ref[...] = 0.5 * (jnp.tanh(0.5 * logits) + 1.0)


def _round_up(v, m):
    return (v + m - 1) // m * m


def _cdiv(a, b):
    return (a + b - 1) // b


def _num_tensorcores():
    """v7x exposes 2 TensorCores per chip; v5e/v6e expose 1."""
    try:
        kind = jax.devices()[0].device_kind.lower()
    except Exception:
        return 1
    return 2 if "v7" in kind else 1


def _pack_params(params):
    """Kernel-side packing of torch-layout params: transpose to (in, 4H), fold
    biases, pre-scale the g-gate quarter by 2 (single-tanh gate trick) and cast
    the weight matrices to bf16 for single-pass MXU dots."""
    (w_ih1, w_hh1, b_ih1, b_hh1,
     w_ih2, w_hh2, b_ih2, b_hh2, w_fc, b_fc) = params
    H = w_hh1.shape[1]

    def scale_g(a):  # gate order [i|f|g|o] along the last axis; scale 3rd quarter
        return a.at[..., 2 * H:3 * H].multiply(2.0)

    wih1_t = scale_g(w_ih1.T).astype(jnp.bfloat16)            # (I, 4H)
    whh1_t = scale_g(w_hh1.T).astype(jnp.bfloat16)            # (H, 4H)
    b1 = scale_g((b_ih1 + b_hh1).reshape(1, 4 * H))           # (1, 4H) f32
    wih2_t = scale_g(w_ih2.T).astype(jnp.bfloat16)            # (H, 4H)
    whh2_t = scale_g(w_hh2.T).astype(jnp.bfloat16)            # (H, 4H)
    b2 = scale_g((b_ih2 + b_hh2).reshape(1, 4 * H))           # (1, 4H) f32
    wfc = w_fc.reshape(1, H).astype(jnp.float32)              # (1, H)
    bfc = b_fc.reshape(1, 1).astype(jnp.float32)              # (1, 1)
    return wih1_t, whh1_t, b1, wih2_t, whh2_t, b2, wfc, bfc


def lstm_ransomware_detector(x, params):
    """x: (B, T, INPUT_SIZE) float32, batch-first like PyTorch.
    params: torch-layout tuple from init_params. Returns sigmoid probs (B,)."""
    B, T, I = x.shape
    H = HIDDEN
    wih1_t, whh1_t, b1, wih2_t, whh2_t, b2, wfc, bfc = _pack_params(params)

    # Batch chunking: one chunk per TensorCore when the batch is big enough
    # (v7x: 2 TCs; v5e/v6e: 1 TC, where extra grid steps only add ~600-cycle
    # overhead). Chunks are rounded to the f32 sublane tile (8) and capped.
    num_tc = _num_tensorcores()
    nb = num_tc if (num_tc > 1 and B >= 16) else 1
    BB = _round_up(_cdiv(B, nb), 8)
    while BB > 256:
        nb += max(num_tc, 1)
        BB = _round_up(_cdiv(B, nb), 8)
    Bp = nb * BB
    if Bp != B:
        x = jnp.pad(x, ((0, Bp - B), (0, 0), (0, 0)))

    # Time-major so per-step slices and the precomputed projection are
    # contiguous sublane-tile slabs. Tiny array -> negligible wrapper cost.
    x_tm = jnp.transpose(x, (1, 0, 2)).astype(jnp.float32)    # (T, Bp, I)

    # VMEM budget (lane dim pads to 128; sublane tile 8 for f32, 16 for bf16):
    # xproj scratch + double-buffered input block / weights / output.
    lane = 128
    xproj_bytes = T * BB * _round_up(4 * H, lane) * 4
    x_blk_bytes = T * _round_up(BB, 8) * _round_up(I, lane) * 4
    w_bytes = ((_round_up(I, 16) + 3 * _round_up(H, 16)) * _round_up(4 * H, lane) * 2
               + 2 * 8 * _round_up(4 * H, lane) * 4
               + 8 * _round_up(H, lane) * 4
               + 8 * lane * 4)
    out_bytes = _round_up(BB, 8) * lane * 4
    footprint = xproj_bytes + 2 * (x_blk_bytes + w_bytes + out_bytes)
    vmem_limit = int(min(max(footprint + (4 << 20), 32 << 20), 64 << 20))

    const = lambda b: (0, 0)
    out = pl.pallas_call(
        _lstm_kernel,
        out_shape=jax.ShapeDtypeStruct((Bp, 1), jnp.float32),
        grid_spec=pltpu.PrefetchScalarGridSpec(
            num_scalar_prefetch=0,
            grid=(nb,),                                # independent batch chunks
            in_specs=[
                pl.BlockSpec((T, BB, I), lambda b: (0, b, 0)),
                pl.BlockSpec((I, 4 * H), const),
                pl.BlockSpec((H, 4 * H), const),
                pl.BlockSpec((1, 4 * H), const),
                pl.BlockSpec((H, 4 * H), const),
                pl.BlockSpec((H, 4 * H), const),
                pl.BlockSpec((1, 4 * H), const),
                pl.BlockSpec((1, H), const),
                pl.BlockSpec((1, 1), const),
            ],
            out_specs=pl.BlockSpec((BB, 1), lambda b: (b, 0)),
            scratch_shapes=[pltpu.VMEM((T, BB, 4 * H), jnp.float32)],
        ),
        compiler_params=pltpu.CompilerParams(
            dimension_semantics=("parallel",),         # chunks shard across TCs (v7x)
            vmem_limit_bytes=vmem_limit),
    )(x_tm, wih1_t, whh1_t, b1, wih2_t, whh2_t, b2, wfc, bfc)

    return out[:B, 0]  # torch .squeeze() on (B, 1) -> (B,)


def init_params(key, input_size=INPUT_SIZE, hidden=HIDDEN):
    """Deterministic synthetic params in PyTorch layout, uniform(-1/sqrt(H), 1/sqrt(H)):
    (w_ih1 (4H,I), w_hh1 (4H,H), b_ih1 (4H,), b_hh1 (4H,),
     w_ih2 (4H,H), w_hh2 (4H,H), b_ih2 (4H,), b_hh2 (4H,), w_fc (1,H), b_fc (1,)).
    Gate order [i | f | g | o]."""
    H = hidden
    k = 1.0 / np.sqrt(H)
    keys = jax.random.split(key, 10)
    u = lambda kk, shape: jax.random.uniform(kk, shape, jnp.float32, -k, k)
    return (u(keys[0], (4 * H, input_size)),
            u(keys[1], (4 * H, H)),
            u(keys[2], (4 * H,)),
            u(keys[3], (4 * H,)),
            u(keys[4], (4 * H, H)),
            u(keys[5], (4 * H, H)),
            u(keys[6], (4 * H,)),
            u(keys[7], (4 * H,)),
            u(keys[8], (1, H)),
            u(keys[9], (1,)))


def reference_forward(x, params):
    """Pure-JAX f32 reference mirroring torch semantics (standard sigmoid/tanh,
    un-fused math, torch weight layout), for checking."""
    (w_ih1, w_hh1, b_ih1, b_hh1,
     w_ih2, w_hh2, b_ih2, b_hh2, w_fc, b_fc) = params
    B, T, I = x.shape
    H = w_hh1.shape[1]

    def cell(inp, h, c, w_ih, w_hh, b_ih, b_hh):
        g = inp @ w_ih.T + h @ w_hh.T + b_ih + b_hh
        i = jax.nn.sigmoid(g[:, 0 * H:1 * H])
        f = jax.nn.sigmoid(g[:, 1 * H:2 * H])
        gg = jnp.tanh(g[:, 2 * H:3 * H])
        o = jax.nn.sigmoid(g[:, 3 * H:4 * H])
        c = f * c + i * gg
        h = o * jnp.tanh(c)
        return h, c

    def step(carry, x_t):
        h1, c1, h2, c2 = carry
        h1, c1 = cell(x_t, h1, c1, w_ih1, w_hh1, b_ih1, b_hh1)
        h2, c2 = cell(h1, h2, c2, w_ih2, w_hh2, b_ih2, b_hh2)
        return (h1, c1, h2, c2), None

    init = tuple(jnp.zeros((B, H), jnp.float32) for _ in range(4))
    (h1, c1, h2, c2), _ = lax.scan(step, init, jnp.transpose(x, (1, 0, 2)))
    return jax.nn.sigmoid(h2 @ w_fc.T + b_fc)[:, 0]


if __name__ == "__main__":
    B, T = 8, 8
    key = jax.random.PRNGKey(0)
    k_x, k_p = jax.random.split(key)
    x = jax.random.normal(k_x, (B, T, INPUT_SIZE), jnp.float32)
    params = init_params(k_p)

    out = jax.block_until_ready(lstm_ransomware_detector(x, params))
    ref = jax.block_until_ready(reference_forward(x, params))

    # bf16 MXU operands (f32 accumulation) -> slightly looser tolerance than f32.
    np.testing.assert_allclose(np.asarray(out), np.asarray(ref), rtol=2e-2, atol=2e-2)
    assert out.shape == (B,)
    print("KERNEL_OK")
</pallas_src>

<mosaic_0001>
module attributes {stable_mosaic.version = 11 : i64} {
  func.func @_lstm_kernel(%arg0: i32, %arg1: memref<8x8x23xf32, #tpu.memory_space<vmem>>, %arg2: memref<23x256xbf16, #tpu.memory_space<vmem>>, %arg3: memref<64x256xbf16, #tpu.memory_space<vmem>>, %arg4: memref<1x256xf32, #tpu.memory_space<vmem>>, %arg5: memref<64x256xbf16, #tpu.memory_space<vmem>>, %arg6: memref<64x256xbf16, #tpu.memory_space<vmem>>, %arg7: memref<1x256xf32, #tpu.memory_space<vmem>>, %arg8: memref<1x64xf32, #tpu.memory_space<vmem>>, %arg9: memref<1x1xf32, #tpu.memory_space<vmem>>, %arg10: memref<8x1xf32, #tpu.memory_space<vmem>>, %arg11: memref<8x8x256xf32, #tpu.memory_space<vmem>>) attributes {dimension_semantics = [#tpu.dimension_semantics<parallel>], iteration_bounds = array<i64: 1>, scalar_prefetch = 0 : i64, scratch_operands = 1 : i64, tpu.core_type = #tpu.core_type<tc>, window_params = [{transform_indices = @transform_0, window_bounds = array<i64: 8, 8, 23>}, {pipeline_mode = #tpu.pipeline_mode<synchronous>, transform_indices = @transform_1, window_bounds = array<i64: 23, 256>}, {pipeline_mode = #tpu.pipeline_mode<synchronous>, transform_indices = @transform_2, window_bounds = array<i64: 64, 256>}, {pipeline_mode = #tpu.pipeline_mode<synchronous>, transform_indices = @transform_3, window_bounds = array<i64: 1, 256>}, {pipeline_mode = #tpu.pipeline_mode<synchronous>, transform_indices = @transform_4, window_bounds = array<i64: 64, 256>}, {pipeline_mode = #tpu.pipeline_mode<synchronous>, transform_indices = @transform_5, window_bounds = array<i64: 64, 256>}, {pipeline_mode = #tpu.pipeline_mode<synchronous>, transform_indices = @transform_6, window_bounds = array<i64: 1, 256>}, {pipeline_mode = #tpu.pipeline_mode<synchronous>, transform_indices = @transform_7, window_bounds = array<i64: 1, 64>}, {pipeline_mode = #tpu.pipeline_mode<synchronous>, transform_indices = @transform_8, window_bounds = array<i64: 1, 1>}, {transform_indices = @transform_9, window_bounds = array<i64: 8, 1>}]} {
    %c0 = arith.constant 0 : index
    %c0_0 = arith.constant 0 : index
    %c0_1 = arith.constant 0 : index
    %0 = vector.load %arg1[%c0, %c0_0, %c0_1] : memref<8x8x23xf32, #tpu.memory_space<vmem>>, vector<8x8x23xf32>
    %1 = vector.shape_cast %0 : vector<8x8x23xf32> to vector<64x23xf32>
    %2 = arith.truncf %1 : vector<64x23xf32> to vector<64x23xbf16>
    %c0_2 = arith.constant 0 : index
    %c0_3 = arith.constant 0 : index
    %3 = vector.load %arg2[%c0_2, %c0_3] : memref<23x256xbf16, #tpu.memory_space<vmem>>, vector<23x256xbf16>
    %cst = arith.constant dense<0.000000e+00> : vector<64x256xf32>
    %4 = tpu.matmul %2, %3, %cst {dimension_numbers = #tpu.dot_dimension_numbers<[1], [0], [0], [1], [0, 0, 1, 1], [], []>} : vector<64x23xbf16>, vector<23x256xbf16>, vector<64x256xf32> -> vector<64x256xf32>
    %c0_4 = arith.constant 0 : index
    %c0_5 = arith.constant 0 : index
    %5 = vector.load %arg4[%c0_4, %c0_5] : memref<1x256xf32, #tpu.memory_space<vmem>>, vector<1x256xf32>
    %6 = vector.broadcast %5 : vector<1x256xf32> to vector<64x256xf32>
    %7 = arith.addf %4, %6 : vector<64x256xf32>
    %8 = vector.shape_cast %7 : vector<64x256xf32> to vector<8x8x256xf32>
    %c0_6 = arith.constant 0 : index
    %c0_7 = arith.constant 0 : index
    %c0_8 = arith.constant 0 : index
    %9 = vector.load %arg11[%c0_6, %c0_7, %c0_8] : memref<8x8x256xf32, #tpu.memory_space<vmem>>, vector<8x8x256xf32>
    tpu.vector_store %arg11[%c0_6, %c0_7, %c0_8], %8 {strides = array<i32>} : memref<8x8x256xf32, #tpu.memory_space<vmem>>, vector<8x8x256xf32>,
    %c0_9 = arith.constant 0 : index
    %c0_10 = arith.constant 0 : index
    %10 = vector.load %arg3[%c0_9, %c0_10] : memref<64x256xbf16, #tpu.memory_space<vmem>>, vector<64x256xbf16>
    %c0_11 = arith.constant 0 : index
    %c0_12 = arith.constant 0 : index
    %11 = vector.load %arg5[%c0_11, %c0_12] : memref<64x256xbf16, #tpu.memory_space<vmem>>, vector<64x256xbf16>
    %c0_13 = arith.constant 0 : index
    %c0_14 = arith.constant 0 : index
    %12 = vector.load %arg6[%c0_13, %c0_14] : memref<64x256xbf16, #tpu.memory_space<vmem>>, vector<64x256xbf16>
    %c0_15 = arith.constant 0 : index
    %c0_16 = arith.constant 0 : index
    %13 = vector.load %arg7[%c0_15, %c0_16] : memref<1x256xf32, #tpu.memory_space<vmem>>, vector<1x256xf32>
    %14 = vector.shape_cast %13 : vector<1x256xf32> to vector<1x256xf32>
    %15 = vector.broadcast %14 : vector<1x256xf32> to vector<8x256xf32>
    %cst_17 = arith.constant 0.000000e+00 : f32
    %16 = vector.broadcast %cst_17 : f32 to vector<8x64xf32>
    %c0_i32 = arith.constant 0 : i32
    %17 = arith.truncf %16 : vector<8x64xf32> to vector<8x64xbf16>
    %cst_18 = arith.constant dense<0.000000e+00> : vector<8x256xf32>
    %18 = tpu.matmul %17, %12, %cst_18 {dimension_numbers = #tpu.dot_dimension_numbers<[1], [0], [0], [1], [0, 0, 1, 1], [], []>} : vector<8x64xbf16>, vector<64x256xbf16>, vector<8x256xf32> -> vector<8x256xf32>
    %19 = arith.index_cast %c0_i32 : i32 to index
    %c0_19 = arith.constant 0 : index
    %c0_20 = arith.constant 0 : index
    %20 = vector.load %arg11[%19, %c0_19, %c0_20] : memref<8x8x256xf32, #tpu.memory_space<vmem>>, vector<1x8x256xf32>
    %21 = vector.shape_cast %20 : vector<1x8x256xf32> to vector<8x256xf32>
    %22 = arith.truncf %16 : vector<8x64xf32> to vector<8x64xbf16>
    %cst_21 = arith.constant dense<0.000000e+00> : vector<8x256xf32>
    %23 = tpu.matmul %22, %10, %cst_21 {dimension_numbers = #tpu.dot_dimension_numbers<[1], [0], [0], [1], [0, 0, 1, 1], [], []>} : vector<8x64xbf16>, vector<64x256xbf16>, vector<8x256xf32> -> vector<8x256xf32>
    %24 = arith.addf %21, %23 : vector<8x256xf32>
    %cst_22 = arith.constant 5.000000e-01 : f32
    %25 = vector.broadcast %cst_22 : f32 to vector<8x256xf32>
    %26 = arith.mulf %25, %24 : vector<8x256xf32>
    %27 = math.tanh %26 : vector<8x256xf32>
    %28 = vector.extract_strided_slice %27 {offsets = [0, 0], sizes = [8, 64], strides = [1, 1]} : vector<8x256xf32> to vector<8x64xf32>
    %cst_23 = arith.constant 1.000000e+00 : f32
    %29 = vector.broadcast %cst_23 : f32 to vector<8x64xf32>
    %30 = arith.addf %28, %29 : vector<8x64xf32>
    %cst_24 = arith.constant 5.000000e-01 : f32
    %31 = vector.broadcast %cst_24 : f32 to vector<8x64xf32>
    %32 = arith.mulf %31, %30 : vector<8x64xf32>
    %33 = vector.extract_strided_slice %27 {offsets = [0, 64], sizes = [8, 64], strides = [1, 1]} : vector<8x256xf32> to vector<8x64xf32>
    %cst_25 = arith.constant 1.000000e+00 : f32
    %34 = vector.broadcast %cst_25 : f32 to vector<8x64xf32>
    %35 = arith.addf %33, %34 : vector<8x64xf32>
    %cst_26 = arith.constant 5.000000e-01 : f32
    %36 = vector.broadcast %cst_26 : f32 to vector<8x64xf32>
    %37 = arith.mulf %36, %35 : vector<8x64xf32>
    %38 = vector.extract_strided_slice %27 {offsets = [0, 128], sizes = [8, 64], strides = [1, 1]} : vector<8x256xf32> to vector<8x64xf32>
    %39 = vector.extract_strided_slice %27 {offsets = [0, 192], sizes = [8, 64], strides = [1, 1]} : vector<8x256xf32> to vector<8x64xf32>
    %cst_27 = arith.constant 1.000000e+00 : f32
    %40 = vector.broadcast %cst_27 : f32 to vector<8x64xf32>
    %41 = arith.addf %39, %40 : vector<8x64xf32>
    %cst_28 = arith.constant 5.000000e-01 : f32
    %42 = vector.broadcast %cst_28 : f32 to vector<8x64xf32>
    %43 = arith.mulf %42, %41 : vector<8x64xf32>
    %44 = arith.mulf %37, %16 : vector<8x64xf32>
    %45 = arith.mulf %32, %38 : vector<8x64xf32>
    %46 = arith.addf %44, %45 : vector<8x64xf32>
    %47 = math.tanh %46 : vector<8x64xf32>
    %48 = arith.mulf %43, %47 : vector<8x64xf32>
    %49 = arith.truncf %48 : vector<8x64xf32> to vector<8x64xbf16>
    %cst_29 = arith.constant dense<0.000000e+00> : vector<8x256xf32>
    %50 = tpu.matmul %49, %11, %cst_29 {dimension_numbers = #tpu.dot_dimension_numbers<[1], [0], [0], [1], [0, 0, 1, 1], [], []>} : vector<8x64xbf16>, vector<64x256xbf16>, vector<8x256xf32> -> vector<8x256xf32>
    %51 = arith.addf %18, %50 : vector<8x256xf32>
    %52 = arith.addf %51, %15 : vector<8x256xf32>
    %cst_30 = arith.constant 5.000000e-01 : f32
    %53 = vector.broadcast %cst_30 : f32 to vector<8x256xf32>
    %54 = arith.mulf %53, %52 : vector<8x256xf32>
    %55 = math.tanh %54 : vector<8x256xf32>
    %56 = vector.extract_strided_slice %55 {offsets = [0, 0], sizes = [8, 64], strides = [1, 1]} : vector<8x256xf32> to vector<8x64xf32>
    %cst_31 = arith.constant 1.000000e+00 : f32
    %57 = vector.broadcast %cst_31 : f32 to vector<8x64xf32>
    %58 = arith.addf %56, %57 : vector<8x64xf32>
    %cst_32 = arith.constant 5.000000e-01 : f32
    %59 = vector.broadcast %cst_32 : f32 to vector<8x64xf32>
    %60 = arith.mulf %59, %58 : vector<8x64xf32>
    %61 = vector.extract_strided_slice %55 {offsets = [0, 64], sizes = [8, 64], strides = [1, 1]} : vector<8x256xf32> to vector<8x64xf32>
    %cst_33 = arith.constant 1.000000e+00 : f32
    %62 = vector.broadcast %cst_33 : f32 to vector<8x64xf32>
    %63 = arith.addf %61, %62 : vector<8x64xf32>
    %cst_34 = arith.constant 5.000000e-01 : f32
    %64 = vector.broadcast %cst_34 : f32 to vector<8x64xf32>
    %65 = arith.mulf %64, %63 : vector<8x64xf32>
    %66 = vector.extract_strided_slice %55 {offsets = [0, 128], sizes = [8, 64], strides = [1, 1]} : vector<8x256xf32> to vector<8x64xf32>
    %67 = vector.extract_strided_slice %55 {offsets = [0, 192], sizes = [8, 64], strides = [1, 1]} : vector<8x256xf32> to vector<8x64xf32>
    %cst_35 = arith.constant 1.000000e+00 : f32
    %68 = vector.broadcast %cst_35 : f32 to vector<8x64xf32>
    %69 = arith.addf %67, %68 : vector<8x64xf32>
    %cst_36 = arith.constant 5.000000e-01 : f32
    %70 = vector.broadcast %cst_36 : f32 to vector<8x64xf32>
    %71 = arith.mulf %70, %69 : vector<8x64xf32>
    %72 = arith.mulf %65, %16 : vector<8x64xf32>
    %73 = arith.mulf %60, %66 : vector<8x64xf32>
    %74 = arith.addf %72, %73 : vector<8x64xf32>
    %75 = math.tanh %74 : vector<8x64xf32>
    %76 = arith.mulf %71, %75 : vector<8x64xf32>
    %c1_i32 = arith.constant 1 : i32
    %77 = arith.truncf %76 : vector<8x64xf32> to vector<8x64xbf16>
    %cst_37 = arith.constant dense<0.000000e+00> : vector<8x256xf32>
    %78 = tpu.matmul %77, %12, %cst_37 {dimension_numbers = #tpu.dot_dimension_numbers<[1], [0], [0], [1], [0, 0, 1, 1], [], []>} : vector<8x64xbf16>, vector<64x256xbf16>, vector<8x256xf32> -> vector<8x256xf32>
    %79 = arith.index_cast %c1_i32 : i32 to index
    %c0_38 = arith.constant 0 : index
    %c0_39 = arith.constant 0 : index
    %80 = vector.load %arg11[%79, %c0_38, %c0_39] : memref<8x8x256xf32, #tpu.memory_space<vmem>>, vector<1x8x256xf32>
    %81 = vector.shape_cast %80 : vector<1x8x256xf32> to vector<8x256xf32>
    %82 = arith.truncf %48 : vector<8x64xf32> to vector<8x64xbf16>
    %cst_40 = arith.constant dense<0.000000e+00> : vector<8x256xf32>
    %83 = tpu.matmul %82, %10, %cst_40 {dimension_numbers = #tpu.dot_dimension_numbers<[1], [0], [0], [1], [0, 0, 1, 1], [], []>} : vector<8x64xbf16>, vector<64x256xbf16>, vector<8x256xf32> -> vector<8x256xf32>
    %84 = arith.addf %81, %83 : vector<8x256xf32>
    %cst_41 = arith.constant 5.000000e-01 : f32
    %85 = vector.broadcast %cst_41 : f32 to vector<8x256xf32>
    %86 = arith.mulf %85, %84 : vector<8x256xf32>
    %87 = math.tanh %86 : vector<8x256xf32>
    %88 = vector.extract_strided_slice %87 {offsets = [0, 0], sizes = [8, 64], strides = [1, 1]} : vector<8x256xf32> to vector<8x64xf32>
    %cst_42 = arith.constant 1.000000e+00 : f32
    %89 = vector.broadcast %cst_42 : f32 to vector<8x64xf32>
    %90 = arith.addf %88, %89 : vector<8x64xf32>
    %cst_43 = arith.constant 5.000000e-01 : f32
    %91 = vector.broadcast %cst_43 : f32 to vector<8x64xf32>
    %92 = arith.mulf %91, %90 : vector<8x64xf32>
    %93 = vector.extract_strided_slice %87 {offsets = [0, 64], sizes = [8, 64], strides = [1, 1]} : vector<8x256xf32> to vector<8x64xf32>
    %cst_44 = arith.constant 1.000000e+00 : f32
    %94 = vector.broadcast %cst_44 : f32 to vector<8x64xf32>
    %95 = arith.addf %93, %94 : vector<8x64xf32>
    %cst_45 = arith.constant 5.000000e-01 : f32
    %96 = vector.broadcast %cst_45 : f32 to vector<8x64xf32>
    %97 = arith.mulf %96, %95 : vector<8x64xf32>
    %98 = vector.extract_strided_slice %87 {offsets = [0, 128], sizes = [8, 64], strides = [1, 1]} : vector<8x256xf32> to vector<8x64xf32>
    %99 = vector.extract_strided_slice %87 {offsets = [0, 192], sizes = [8, 64], strides = [1, 1]} : vector<8x256xf32> to vector<8x64xf32>
    %cst_46 = arith.constant 1.000000e+00 : f32
    %100 = vector.broadcast %cst_46 : f32 to vector<8x64xf32>
    %101 = arith.addf %99, %100 : vector<8x64xf32>
    %cst_47 = arith.constant 5.000000e-01 : f32
    %102 = vector.broadcast %cst_47 : f32 to vector<8x64xf32>
    %103 = arith.mulf %102, %101 : vector<8x64xf32>
    %104 = arith.mulf %97, %46 : vector<8x64xf32>
    %105 = arith.mulf %92, %98 : vector<8x64xf32>
    %106 = arith.addf %104, %105 : vector<8x64xf32>
    %107 = math.tanh %106 : vector<8x64xf32>
    %108 = arith.mulf %103, %107 : vector<8x64xf32>
    %109 = arith.truncf %108 : vector<8x64xf32> to vector<8x64xbf16>
    %cst_48 = arith.constant dense<0.000000e+00> : vector<8x256xf32>
    %110 = tpu.matmul %109, %11, %cst_48 {dimension_numbers = #tpu.dot_dimension_numbers<[1], [0], [0], [1], [0, 0, 1, 1], [], []>} : vector<8x64xbf16>, vector<64x256xbf16>, vector<8x256xf32> -> vector<8x256xf32>
    %111 = arith.addf %78, %110 : vector<8x256xf32>
    %112 = arith.addf %111, %15 : vector<8x256xf32>
    %cst_49 = arith.constant 5.000000e-01 : f32
    %113 = vector.broadcast %cst_49 : f32 to vector<8x256xf32>
    %114 = arith.mulf %113, %112 : vector<8x256xf32>
    %115 = math.tanh %114 : vector<8x256xf32>
    %116 = vector.extract_strided_slice %115 {offsets = [0, 0], sizes = [8, 64], strides = [1, 1]} : vector<8x256xf32> to vector<8x64xf32>
    %cst_50 = arith.constant 1.000000e+00 : f32
    %117 = vector.broadcast %cst_50 : f32 to vector<8x64xf32>
    %118 = arith.addf %116, %117 : vector<8x64xf32>
    %cst_51 = arith.constant 5.000000e-01 : f32
    %119 = vector.broadcast %cst_51 : f32 to vector<8x64xf32>
    %120 = arith.mulf %119, %118 : vector<8x64xf32>
    %121 = vector.extract_strided_slice %115 {offsets = [0, 64], sizes = [8, 64], strides = [1, 1]} : vector<8x256xf32> to vector<8x64xf32>
    %cst_52 = arith.constant 1.000000e+00 : f32
    %122 = vector.broadcast %cst_52 : f32 to vector<8x64xf32>
    %123 = arith.addf %121, %122 : vector<8x64xf32>
    %cst_53 = arith.constant 5.000000e-01 : f32
    %124 = vector.broadcast %cst_53 : f32 to vector<8x64xf32>
    %125 = arith.mulf %124, %123 : vector<8x64xf32>
    %126 = vector.extract_strided_slice %115 {offsets = [0, 128], sizes = [8, 64], strides = [1, 1]} : vector<8x256xf32> to vector<8x64xf32>
    %127 = vector.extract_strided_slice %115 {offsets = [0, 192], sizes = [8, 64], strides = [1, 1]} : vector<8x256xf32> to vector<8x64xf32>
    %cst_54 = arith.constant 1.000000e+00 : f32
    %128 = vector.broadcast %cst_54 : f32 to vector<8x64xf32>
    %129 = arith.addf %127, %128 : vector<8x64xf32>
    %cst_55 = arith.constant 5.000000e-01 : f32
    %130 = vector.broadcast %cst_55 : f32 to vector<8x64xf32>
    %131 = arith.mulf %130, %129 : vector<8x64xf32>
    %132 = arith.mulf %125, %74 : vector<8x64xf32>
    %133 = arith.mulf %120, %126 : vector<8x64xf32>
    %134 = arith.addf %132, %133 : vector<8x64xf32>
    %135 = math.tanh %134 : vector<8x64xf32>
    %136 = arith.mulf %131, %135 : vector<8x64xf32>
    %c2_i32 = arith.constant 2 : i32
    %137 = arith.truncf %136 : vector<8x64xf32> to vector<8x64xbf16>
    %cst_56 = arith.constant dense<0.000000e+00> : vector<8x256xf32>
    %138 = tpu.matmul %137, %12, %cst_56 {dimension_numbers = #tpu.dot_dimension_numbers<[1], [0], [0], [1], [0, 0, 1, 1], [], []>} : vector<8x64xbf16>, vector<64x256xbf16>, vector<8x256xf32> -> vector<8x256xf32>
    %139 = arith.index_cast %c2_i32 : i32 to index
    %c0_57 = arith.constant 0 : index
    %c0_58 = arith.constant 0 : index
    %140 = vector.load %arg11[%139, %c0_57, %c0_58] : memref<8x8x256xf32, #tpu.memory_space<vmem>>, vector<1x8x256xf32>
    %141 = vector.shape_cast %140 : vector<1x8x256xf32> to vector<8x256xf32>
    %142 = arith.truncf %108 : vector<8x64xf32> to vector<8x64xbf16>
    %cst_59 = arith.constant dense<0.000000e+00> : vector<8x256xf32>
    %143 = tpu.matmul %142, %10, %cst_59 {dimension_numbers = #tpu.dot_dimension_numbers<[1], [0], [0], [1], [0, 0, 1, 1], [], []>} : vector<8x64xbf16>, vector<64x256xbf16>, vector<8x256xf32> -> vector<8x256xf32>
    %144 = arith.addf %141, %143 : vector<8x256xf32>
    %cst_60 = arith.constant 5.000000e-01 : f32
    %145 = vector.broadcast %cst_60 : f32 to vector<8x256xf32>
    %146 = arith.mulf %145, %144 : vector<8x256xf32>
    %147 = math.tanh %146 : vector<8x256xf32>
    %148 = vector.extract_strided_slice %147 {offsets = [0, 0], sizes = [8, 64], strides = [1, 1]} : vector<8x256xf32> to vector<8x64xf32>
    %cst_61 = arith.constant 1.000000e+00 : f32
    %149 = vector.broadcast %cst_61 : f32 to vector<8x64xf32>
    %150 = arith.addf %148, %149 : vector<8x64xf32>
    %cst_62 = arith.constant 5.000000e-01 : f32
    %151 = vector.broadcast %cst_62 : f32 to vector<8x64xf32>
    %152 = arith.mulf %151, %150 : vector<8x64xf32>
    %153 = vector.extract_strided_slice %147 {offsets = [0, 64], sizes = [8, 64], strides = [1, 1]} : vector<8x256xf32> to vector<8x64xf32>
    %cst_63 = arith.constant 1.000000e+00 : f32
    %154 = vector.broadcast %cst_63 : f32 to vector<8x64xf32>
    %155 = arith.addf %153, %154 : vector<8x64xf32>
    %cst_64 = arith.constant 5.000000e-01 : f32
    %156 = vector.broadcast %cst_64 : f32 to vector<8x64xf32>
    %157 = arith.mulf %156, %155 : vector<8x64xf32>
    %158 = vector.extract_strided_slice %147 {offsets = [0, 128], sizes = [8, 64], strides = [1, 1]} : vector<8x256xf32> to vector<8x64xf32>
    %159 = vector.extract_strided_slice %147 {offsets = [0, 192], sizes = [8, 64], strides = [1, 1]} : vector<8x256xf32> to vector<8x64xf32>
    %cst_65 = arith.constant 1.000000e+00 : f32
    %160 = vector.broadcast %cst_65 : f32 to vector<8x64xf32>
    %161 = arith.addf %159, %160 : vector<8x64xf32>
    %cst_66 = arith.constant 5.000000e-01 : f32
    %162 = vector.broadcast %cst_66 : f32 to vector<8x64xf32>
    %163 = arith.mulf %162, %161 : vector<8x64xf32>
    %164 = arith.mulf %157, %106 : vector<8x64xf32>
    %165 = arith.mulf %152, %158 : vector<8x64xf32>
    %166 = arith.addf %164, %165 : vector<8x64xf32>
    %167 = math.tanh %166 : vector<8x64xf32>
    %168 = arith.mulf %163, %167 : vector<8x64xf32>
    %169 = arith.truncf %168 : vector<8x64xf32> to vector<8x64xbf16>
    %cst_67 = arith.constant dense<0.000000e+00> : vector<8x256xf32>
    %170 = tpu.matmul %169, %11, %cst_67 {dimension_numbers = #tpu.dot_dimension_numbers<[1], [0], [0], [1], [0, 0, 1, 1], [], []>} : vector<8x64xbf16>, vector<64x256xbf16>, vector<8x256xf32> -> vector<8x256xf32>
    %171 = arith.addf %138, %170 : vector<8x256xf32>
    %172 = arith.addf %171, %15 : vector<8x256xf32>
    %cst_68 = arith.constant 5.000000e-01 : f32
    %173 = vector.broadcast %cst_68 : f32 to vector<8x256xf32>
    %174 = arith.mulf %173, %172 : vector<8x256xf32>
    %175 = math.tanh %174 : vector<8x256xf32>
    %176 = vector.extract_strided_slice %175 {offsets = [0, 0], sizes = [8, 64], strides = [1, 1]} : vector<8x256xf32> to vector<8x64xf32>
    %cst_69 = arith.constant 1.000000e+00 : f32
    %177 = vector.broadcast %cst_69 : f32 to vector<8x64xf32>
    %178 = arith.addf %176, %177 : vector<8x64xf32>
    %cst_70 = arith.constant 5.000000e-01 : f32
    %179 = vector.broadcast %cst_70 : f32 to vector<8x64xf32>
    %180 = arith.mulf %179, %178 : vector<8x64xf32>
    %181 = vector.extract_strided_slice %175 {offsets = [0, 64], sizes = [8, 64], strides = [1, 1]} : vector<8x256xf32> to vector<8x64xf32>
    %cst_71 = arith.constant 1.000000e+00 : f32
    %182 = vector.broadcast %cst_71 : f32 to vector<8x64xf32>
    %183 = arith.addf %181, %182 : vector<8x64xf32>
    %cst_72 = arith.constant 5.000000e-01 : f32
    %184 = vector.broadcast %cst_72 : f32 to vector<8x64xf32>
    %185 = arith.mulf %184, %183 : vector<8x64xf32>
    %186 = vector.extract_strided_slice %175 {offsets = [0, 128], sizes = [8, 64], strides = [1, 1]} : vector<8x256xf32> to vector<8x64xf32>
    %187 = vector.extract_strided_slice %175 {offsets = [0, 192], sizes = [8, 64], strides = [1, 1]} : vector<8x256xf32> to vector<8x64xf32>
    %cst_73 = arith.constant 1.000000e+00 : f32
    %188 = vector.broadcast %cst_73 : f32 to vector<8x64xf32>
    %189 = arith.addf %187, %188 : vector<8x64xf32>
    %cst_74 = arith.constant 5.000000e-01 : f32
    %190 = vector.broadcast %cst_74 : f32 to vector<8x64xf32>
    %191 = arith.mulf %190, %189 : vector<8x64xf32>
    %192 = arith.mulf %185, %134 : vector<8x64xf32>
    %193 = arith.mulf %180, %186 : vector<8x64xf32>
    %194 = arith.addf %192, %193 : vector<8x64xf32>
    %195 = math.tanh %194 : vector<8x64xf32>
    %196 = arith.mulf %191, %195 : vector<8x64xf32>
    %c3_i32 = arith.constant 3 : i32
    %197 = arith.truncf %196 : vector<8x64xf32> to vector<8x64xbf16>
    %cst_75 = arith.constant dense<0.000000e+00> : vector<8x256xf32>
    %198 = tpu.matmul %197, %12, %cst_75 {dimension_numbers = #tpu.dot_dimension_numbers<[1], [0], [0], [1], [0, 0, 1, 1], [], []>} : vector<8x64xbf16>, vector<64x256xbf16>, vector<8x256xf32> -> vector<8x256xf32>
    %199 = arith.index_cast %c3_i32 : i32 to index
    %c0_76 = arith.constant 0 : index
    %c0_77 = arith.constant 0 : index
    %200 = vector.load %arg11[%199, %c0_76, %c0_77] : memref<8x8x256xf32, #tpu.memory_space<vmem>>, vector<1x8x256xf32>
    %201 = vector.shape_cast %200 : vector<1x8x256xf32> to vector<8x256xf32>
    %202 = arith.truncf %168 : vector<8x64xf32> to vector<8x64xbf16>
    %cst_78 = arith.constant dense<0.000000e+00> : vector<8x256xf32>
    %203 = tpu.matmul %202, %10, %cst_78 {dimension_numbers = #tpu.dot_dimension_numbers<[1], [0], [0], [1], [0, 0, 1, 1], [], []>} : vector<8x64xbf16>, vector<64x256xbf16>, vector<8x256xf32> -> vector<8x256xf32>
    %204 = arith.addf %201, %203 : vector<8x256xf32>
    %cst_79 = arith.constant 5.000000e-01 : f32
    %205 = vector.broadcast %cst_79 : f32 to vector<8x256xf32>
    %206 = arith.mulf %205, %204 : vector<8x256xf32>
    %207 = math.tanh %206 : vector<8x256xf32>
    %208 = vector.extract_strided_slice %207 {offsets = [0, 0], sizes = [8, 64], strides = [1, 1]} : vector<8x256xf32> to vector<8x64xf32>
    %cst_80 = arith.constant 1.000000e+00 : f32
    %209 = vector.broadcast %cst_80 : f32 to vector<8x64xf32>
    %210 = arith.addf %208, %209 : vector<8x64xf32>
    %cst_81 = arith.constant 5.000000e-01 : f32
    %211 = vector.broadcast %cst_81 : f32 to vector<8x64xf32>
    %212 = arith.mulf %211, %210 : vector<8x64xf32>
    %213 = vector.extract_strided_slice %207 {offsets = [0, 64], sizes = [8, 64], strides = [1, 1]} : vector<8x256xf32> to vector<8x64xf32>
    %cst_82 = arith.constant 1.000000e+00 : f32
    %214 = vector.broadcast %cst_82 : f32 to vector<8x64xf32>
    %215 = arith.addf %213, %214 : vector<8x64xf32>
    %cst_83 = arith.constant 5.000000e-01 : f32
    %216 = vector.broadcast %cst_83 : f32 to vector<8x64xf32>
    %217 = arith.mulf %216, %215 : vector<8x64xf32>
    %218 = vector.extract_strided_slice %207 {offsets = [0, 128], sizes = [8, 64], strides = [1, 1]} : vector<8x256xf32> to vector<8x64xf32>
    %219 = vector.extract_strided_slice %207 {offsets = [0, 192], sizes = [8, 64], strides = [1, 1]} : vector<8x256xf32> to vector<8x64xf32>
    %cst_84 = arith.constant 1.000000e+00 : f32
    %220 = vector.broadcast %cst_84 : f32 to vector<8x64xf32>
    %221 = arith.addf %219, %220 : vector<8x64xf32>
    %cst_85 = arith.constant 5.000000e-01 : f32
    %222 = vector.broadcast %cst_85 : f32 to vector<8x64xf32>
    %223 = arith.mulf %222, %221 : vector<8x64xf32>
    %224 = arith.mulf %217, %166 : vector<8x64xf32>
    %225 = arith.mulf %212, %218 : vector<8x64xf32>
    %226 = arith.addf %224, %225 : vector<8x64xf32>
    %227 = math.tanh %226 : vector<8x64xf32>
    %228 = arith.mulf %223, %227 : vector<8x64xf32>
    %229 = arith.truncf %228 : vector<8x64xf32> to vector<8x64xbf16>
    %cst_86 = arith.constant dense<0.000000e+00> : vector<8x256xf32>
    %230 = tpu.matmul %229, %11, %cst_86 {dimension_numbers = #tpu.dot_dimension_numbers<[1], [0], [0], [1], [0, 0, 1, 1], [], []>} : vector<8x64xbf16>, vector<64x256xbf16>, vector<8x256xf32> -> vector<8x256xf32>
    %231 = arith.addf %198, %230 : vector<8x256xf32>
    %232 = arith.addf %231, %15 : vector<8x256xf32>
    %cst_87 = arith.constant 5.000000e-01 : f32
    %233 = vector.broadcast %cst_87 : f32 to vector<8x256xf32>
    %234 = arith.mulf %233, %232 : vector<8x256xf32>
    %235 = math.tanh %234 : vector<8x256xf32>
    %236 = vector.extract_strided_slice %235 {offsets = [0, 0], sizes = [8, 64], strides = [1, 1]} : vector<8x256xf32> to vector<8x64xf32>
    %cst_88 = arith.constant 1.000000e+00 : f32
    %237 = vector.broadcast %cst_88 : f32 to vector<8x64xf32>
    %238 = arith.addf %236, %237 : vector<8x64xf32>
    %cst_89 = arith.constant 5.000000e-01 : f32
    %239 = vector.broadcast %cst_89 : f32 to vector<8x64xf32>
    %240 = arith.mulf %239, %238 : vector<8x64xf32>
    %241 = vector.extract_strided_slice %235 {offsets = [0, 64], sizes = [8, 64], strides = [1, 1]} : vector<8x256xf32> to vector<8x64xf32>
    %cst_90 = arith.constant 1.000000e+00 : f32
    %242 = vector.broadcast %cst_90 : f32 to vector<8x64xf32>
    %243 = arith.addf %241, %242 : vector<8x64xf32>
    %cst_91 = arith.constant 5.000000e-01 : f32
    %244 = vector.broadcast %cst_91 : f32 to vector<8x64xf32>
    %245 = arith.mulf %244, %243 : vector<8x64xf32>
    %246 = vector.extract_strided_slice %235 {offsets = [0, 128], sizes = [8, 64], strides = [1, 1]} : vector<8x256xf32> to vector<8x64xf32>
    %247 = vector.extract_strided_slice %235 {offsets = [0, 192], sizes = [8, 64], strides = [1, 1]} : vector<8x256xf32> to vector<8x64xf32>
    %cst_92 = arith.constant 1.000000e+00 : f32
    %248 = vector.broadcast %cst_92 : f32 to vector<8x64xf32>
    %249 = arith.addf %247, %248 : vector<8x64xf32>
    %cst_93 = arith.constant 5.000000e-01 : f32
    %250 = vector.broadcast %cst_93 : f32 to vector<8x64xf32>
    %251 = arith.mulf %250, %249 : vector<8x64xf32>
    %252 = arith.mulf %245, %194 : vector<8x64xf32>
    %253 = arith.mulf %240, %246 : vector<8x64xf32>
    %254 = arith.addf %252, %253 : vector<8x64xf32>
    %255 = math.tanh %254 : vector<8x64xf32>
    %256 = arith.mulf %251, %255 : vector<8x64xf32>
    %c4_i32 = arith.constant 4 : i32
    %257 = arith.truncf %256 : vector<8x64xf32> to vector<8x64xbf16>
    %cst_94 = arith.constant dense<0.000000e+00> : vector<8x256xf32>
    %258 = tpu.matmul %257, %12, %cst_94 {dimension_numbers = #tpu.dot_dimension_numbers<[1], [0], [0], [1], [0, 0, 1, 1], [], []>} : vector<8x64xbf16>, vector<64x256xbf16>, vector<8x256xf32> -> vector<8x256xf32>
    %259 = arith.index_cast %c4_i32 : i32 to index
    %c0_95 = arith.constant 0 : index
    %c0_96 = arith.constant 0 : index
    %260 = vector.load %arg11[%259, %c0_95, %c0_96] : memref<8x8x256xf32, #tpu.memory_space<vmem>>, vector<1x8x256xf32>
    %261 = vector.shape_cast %260 : vector<1x8x256xf32> to vector<8x256xf32>
    %262 = arith.truncf %228 : vector<8x64xf32> to vector<8x64xbf16>
    %cst_97 = arith.constant dense<0.000000e+00> : vector<8x256xf32>
    %263 = tpu.matmul %262, %10, %cst_97 {dimension_numbers = #tpu.dot_dimension_numbers<[1], [0], [0], [1], [0, 0, 1, 1], [], []>} : vector<8x64xbf16>, vector<64x256xbf16>, vector<8x256xf32> -> vector<8x256xf32>
    %264 = arith.addf %261, %263 : vector<8x256xf32>
    %cst_98 = arith.constant 5.000000e-01 : f32
    %265 = vector.broadcast %cst_98 : f32 to vector<8x256xf32>
    %266 = arith.mulf %265, %264 : vector<8x256xf32>
    %267 = math.tanh %266 : vector<8x256xf32>
    %268 = vector.extract_strided_slice %267 {offsets = [0, 0], sizes = [8, 64], strides = [1, 1]} : vector<8x256xf32> to vector<8x64xf32>
    %cst_99 = arith.constant 1.000000e+00 : f32
    %269 = vector.broadcast %cst_99 : f32 to vector<8x64xf32>
    %270 = arith.addf %268, %269 : vector<8x64xf32>
    %cst_100 = arith.constant 5.000000e-01 : f32
    %271 = vector.broadcast %cst_100 : f32 to vector<8x64xf32>
    %272 = arith.mulf %271, %270 : vector<8x64xf32>
    %273 = vector.extract_strided_slice %267 {offsets = [0, 64], sizes = [8, 64], strides = [1, 1]} : vector<8x256xf32> to vector<8x64xf32>
    %cst_101 = arith.constant 1.000000e+00 : f32
    %274 = vector.broadcast %cst_101 : f32 to vector<8x64xf32>
    %275 = arith.addf %273, %274 : vector<8x64xf32>
    %cst_102 = arith.constant 5.000000e-01 : f32
    %276 = vector.broadcast %cst_102 : f32 to vector<8x64xf32>
    %277 = arith.mulf %276, %275 : vector<8x64xf32>
    %278 = vector.extract_strided_slice %267 {offsets = [0, 128], sizes = [8, 64], strides = [1, 1]} : vector<8x256xf32> to vector<8x64xf32>
    %279 = vector.extract_strided_slice %267 {offsets = [0, 192], sizes = [8, 64], strides = [1, 1]} : vector<8x256xf32> to vector<8x64xf32>
    %cst_103 = arith.constant 1.000000e+00 : f32
    %280 = vector.broadcast %cst_103 : f32 to vector<8x64xf32>
    %281 = arith.addf %279, %280 : vector<8x64xf32>
    %cst_104 = arith.constant 5.000000e-01 : f32
    %282 = vector.broadcast %cst_104 : f32 to vector<8x64xf32>
    %283 = arith.mulf %282, %281 : vector<8x64xf32>
    %284 = arith.mulf %277, %226 : vector<8x64xf32>
    %285 = arith.mulf %272, %278 : vector<8x64xf32>
    %286 = arith.addf %284, %285 : vector<8x64xf32>
    %287 = math.tanh %286 : vector<8x64xf32>
    %288 = arith.mulf %283, %287 : vector<8x64xf32>
    %289 = arith.truncf %288 : vector<8x64xf32> to vector<8x64xbf16>
    %cst_105 = arith.constant dense<0.000000e+00> : vector<8x256xf32>
    %290 = tpu.matmul %289, %11, %cst_105 {dimension_numbers = #tpu.dot_dimension_numbers<[1], [0], [0], [1], [0, 0, 1, 1], [], []>} : vector<8x64xbf16>, vector<64x256xbf16>, vector<8x256xf32> -> vector<8x256xf32>
    %291 = arith.addf %258, %290 : vector<8x256xf32>
    %292 = arith.addf %291, %15 : vector<8x256xf32>
    %cst_106 = arith.constant 5.000000e-01 : f32
    %293 = vector.broadcast %cst_106 : f32 to vector<8x256xf32>
    %294 = arith.mulf %293, %292 : vector<8x256xf32>
    %295 = math.tanh %294 : vector<8x256xf32>
    %296 = vector.extract_strided_slice %295 {offsets = [0, 0], sizes = [8, 64], strides = [1, 1]} : vector<8x256xf32> to vector<8x64xf32>
    %cst_107 = arith.constant 1.000000e+00 : f32
    %297 = vector.broadcast %cst_107 : f32 to vector<8x64xf32>
    %298 = arith.addf %296, %297 : vector<8x64xf32>
    %cst_108 = arith.constant 5.000000e-01 : f32
    %299 = vector.broadcast %cst_108 : f32 to vector<8x64xf32>
    %300 = arith.mulf %299, %298 : vector<8x64xf32>
    %301 = vector.extract_strided_slice %295 {offsets = [0, 64], sizes = [8, 64], strides = [1, 1]} : vector<8x256xf32> to vector<8x64xf32>
    %cst_109 = arith.constant 1.000000e+00 : f32
    %302 = vector.broadcast %cst_109 : f32 to vector<8x64xf32>
    %303 = arith.addf %301, %302 : vector<8x64xf32>
    %cst_110 = arith.constant 5.000000e-01 : f32
    %304 = vector.broadcast %cst_110 : f32 to vector<8x64xf32>
    %305 = arith.mulf %304, %303 : vector<8x64xf32>
    %306 = vector.extract_strided_slice %295 {offsets = [0, 128], sizes = [8, 64], strides = [1, 1]} : vector<8x256xf32> to vector<8x64xf32>
    %307 = vector.extract_strided_slice %295 {offsets = [0, 192], sizes = [8, 64], strides = [1, 1]} : vector<8x256xf32> to vector<8x64xf32>
    %cst_111 = arith.constant 1.000000e+00 : f32
    %308 = vector.broadcast %cst_111 : f32 to vector<8x64xf32>
    %309 = arith.addf %307, %308 : vector<8x64xf32>
    %cst_112 = arith.constant 5.000000e-01 : f32
    %310 = vector.broadcast %cst_112 : f32 to vector<8x64xf32>
    %311 = arith.mulf %310, %309 : vector<8x64xf32>
    %312 = arith.mulf %305, %254 : vector<8x64xf32>
    %313 = arith.mulf %300, %306 : vector<8x64xf32>
    %314 = arith.addf %312, %313 : vector<8x64xf32>
    %315 = math.tanh %314 : vector<8x64xf32>
    %316 = arith.mulf %311, %315 : vector<8x64xf32>
    %c5_i32 = arith.constant 5 : i32
    %317 = arith.truncf %316 : vector<8x64xf32> to vector<8x64xbf16>
    %cst_113 = arith.constant dense<0.000000e+00> : vector<8x256xf32>
    %318 = tpu.matmul %317, %12, %cst_113 {dimension_numbers = #tpu.dot_dimension_numbers<[1], [0], [0], [1], [0, 0, 1, 1], [], []>} : vector<8x64xbf16>, vector<64x256xbf16>, vector<8x256xf32> -> vector<8x256xf32>
    %319 = arith.index_cast %c5_i32 : i32 to index
    %c0_114 = arith.constant 0 : index
    %c0_115 = arith.constant 0 : index
    %320 = vector.load %arg11[%319, %c0_114, %c0_115] : memref<8x8x256xf32, #tpu.memory_space<vmem>>, vector<1x8x256xf32>
    %321 = vector.shape_cast %320 : vector<1x8x256xf32> to vector<8x256xf32>
    %322 = arith.truncf %288 : vector<8x64xf32> to vector<8x64xbf16>
    %cst_116 = arith.constant dense<0.000000e+00> : vector<8x256xf32>
    %323 = tpu.matmul %322, %10, %cst_116 {dimension_numbers = #tpu.dot_dimension_numbers<[1], [0], [0], [1], [0, 0, 1, 1], [], []>} : vector<8x64xbf16>, vector<64x256xbf16>, vector<8x256xf32> -> vector<8x256xf32>
    %324 = arith.addf %321, %323 : vector<8x256xf32>
    %cst_117 = arith.constant 5.000000e-01 : f32
    %325 = vector.broadcast %cst_117 : f32 to vector<8x256xf32>
    %326 = arith.mulf %325, %324 : vector<8x256xf32>
    %327 = math.tanh %326 : vector<8x256xf32>
    %328 = vector.extract_strided_slice %327 {offsets = [0, 0], sizes = [8, 64], strides = [1, 1]} : vector<8x256xf32> to vector<8x64xf32>
    %cst_118 = arith.constant 1.000000e+00 : f32
    %329 = vector.broadcast %cst_118 : f32 to vector<8x64xf32>
    %330 = arith.addf %328, %329 : vector<8x64xf32>
    %cst_119 = arith.constant 5.000000e-01 : f32
    %331 = vector.broadcast %cst_119 : f32 to vector<8x64xf32>
    %332 = arith.mulf %331, %330 : vector<8x64xf32>
    %333 = vector.extract_strided_slice %327 {offsets = [0, 64], sizes = [8, 64], strides = [1, 1]} : vector<8x256xf32> to vector<8x64xf32>
    %cst_120 = arith.constant 1.000000e+00 : f32
    %334 = vector.broadcast %cst_120 : f32 to vector<8x64xf32>
    %335 = arith.addf %333, %334 : vector<8x64xf32>
    %cst_121 = arith.constant 5.000000e-01 : f32
    %336 = vector.broadcast %cst_121 : f32 to vector<8x64xf32>
    %337 = arith.mulf %336, %335 : vector<8x64xf32>
    %338 = vector.extract_strided_slice %327 {offsets = [0, 128], sizes = [8, 64], strides = [1, 1]} : vector<8x256xf32> to vector<8x64xf32>
    %339 = vector.extract_strided_slice %327 {offsets = [0, 192], sizes = [8, 64], strides = [1, 1]} : vector<8x256xf32> to vector<8x64xf32>
    %cst_122 = arith.constant 1.000000e+00 : f32
    %340 = vector.broadcast %cst_122 : f32 to vector<8x64xf32>
    %341 = arith.addf %339, %340 : vector<8x64xf32>
    %cst_123 = arith.constant 5.000000e-01 : f32
    %342 = vector.broadcast %cst_123 : f32 to vector<8x64xf32>
    %343 = arith.mulf %342, %341 : vector<8x64xf32>
    %344 = arith.mulf %337, %286 : vector<8x64xf32>
    %345 = arith.mulf %332, %338 : vector<8x64xf32>
    %346 = arith.addf %344, %345 : vector<8x64xf32>
    %347 = math.tanh %346 : vector<8x64xf32>
    %348 = arith.mulf %343, %347 : vector<8x64xf32>
    %349 = arith.truncf %348 : vector<8x64xf32> to vector<8x64xbf16>
    %cst_124 = arith.constant dense<0.000000e+00> : vector<8x256xf32>
    %350 = tpu.matmul %349, %11, %cst_124 {dimension_numbers = #tpu.dot_dimension_numbers<[1], [0], [0], [1], [0, 0, 1, 1], [], []>} : vector<8x64xbf16>, vector<64x256xbf16>, vector<8x256xf32> -> vector<8x256xf32>
    %351 = arith.addf %318, %350 : vector<8x256xf32>
    %352 = arith.addf %351, %15 : vector<8x256xf32>
    %cst_125 = arith.constant 5.000000e-01 : f32
    %353 = vector.broadcast %cst_125 : f32 to vector<8x256xf32>
    %354 = arith.mulf %353, %352 : vector<8x256xf32>
    %355 = math.tanh %354 : vector<8x256xf32>
    %356 = vector.extract_strided_slice %355 {offsets = [0, 0], sizes = [8, 64], strides = [1, 1]} : vector<8x256xf32> to vector<8x64xf32>
    %cst_126 = arith.constant 1.000000e+00 : f32
    %357 = vector.broadcast %cst_126 : f32 to vector<8x64xf32>
    %358 = arith.addf %356, %357 : vector<8x64xf32>
    %cst_127 = arith.constant 5.000000e-01 : f32
    %359 = vector.broadcast %cst_127 : f32 to vector<8x64xf32>
    %360 = arith.mulf %359, %358 : vector<8x64xf32>
    %361 = vector.extract_strided_slice %355 {offsets = [0, 64], sizes = [8, 64], strides = [1, 1]} : vector<8x256xf32> to vector<8x64xf32>
    %cst_128 = arith.constant 1.000000e+00 : f32
    %362 = vector.broadcast %cst_128 : f32 to vector<8x64xf32>
    %363 = arith.addf %361, %362 : vector<8x64xf32>
    %cst_129 = arith.constant 5.000000e-01 : f32
    %364 = vector.broadcast %cst_129 : f32 to vector<8x64xf32>
    %365 = arith.mulf %364, %363 : vector<8x64xf32>
    %366 = vector.extract_strided_slice %355 {offsets = [0, 128], sizes = [8, 64], strides = [1, 1]} : vector<8x256xf32> to vector<8x64xf32>
    %367 = vector.extract_strided_slice %355 {offsets = [0, 192], sizes = [8, 64], strides = [1, 1]} : vector<8x256xf32> to vector<8x64xf32>
    %cst_130 = arith.constant 1.000000e+00 : f32
    %368 = vector.broadcast %cst_130 : f32 to vector<8x64xf32>
    %369 = arith.addf %367, %368 : vector<8x64xf32>
    %cst_131 = arith.constant 5.000000e-01 : f32
    %370 = vector.broadcast %cst_131 : f32 to vector<8x64xf32>
    %371 = arith.mulf %370, %369 : vector<8x64xf32>
    %372 = arith.mulf %365, %314 : vector<8x64xf32>
    %373 = arith.mulf %360, %366 : vector<8x64xf32>
    %374 = arith.addf %372, %373 : vector<8x64xf32>
    %375 = math.tanh %374 : vector<8x64xf32>
    %376 = arith.mulf %371, %375 : vector<8x64xf32>
    %c6_i32 = arith.constant 6 : i32
    %377 = arith.truncf %376 : vector<8x64xf32> to vector<8x64xbf16>
    %cst_132 = arith.constant dense<0.000000e+00> : vector<8x256xf32>
    %378 = tpu.matmul %377, %12, %cst_132 {dimension_numbers = #tpu.dot_dimension_numbers<[1], [0], [0], [1], [0, 0, 1, 1], [], []>} : vector<8x64xbf16>, vector<64x256xbf16>, vector<8x256xf32> -> vector<8x256xf32>
    %379 = arith.index_cast %c6_i32 : i32 to index
    %c0_133 = arith.constant 0 : index
    %c0_134 = arith.constant 0 : index
    %380 = vector.load %arg11[%379, %c0_133, %c0_134] : memref<8x8x256xf32, #tpu.memory_space<vmem>>, vector<1x8x256xf32>
    %381 = vector.shape_cast %380 : vector<1x8x256xf32> to vector<8x256xf32>
    %382 = arith.truncf %348 : vector<8x64xf32> to vector<8x64xbf16>
    %cst_135 = arith.constant dense<0.000000e+00> : vector<8x256xf32>
    %383 = tpu.matmul %382, %10, %cst_135 {dimension_numbers = #tpu.dot_dimension_numbers<[1], [0], [0], [1], [0, 0, 1, 1], [], []>} : vector<8x64xbf16>, vector<64x256xbf16>, vector<8x256xf32> -> vector<8x256xf32>
    %384 = arith.addf %381, %383 : vector<8x256xf32>
    %cst_136 = arith.constant 5.000000e-01 : f32
    %385 = vector.broadcast %cst_136 : f32 to vector<8x256xf32>
    %386 = arith.mulf %385, %384 : vector<8x256xf32>
    %387 = math.tanh %386 : vector<8x256xf32>
    %388 = vector.extract_strided_slice %387 {offsets = [0, 0], sizes = [8, 64], strides = [1, 1]} : vector<8x256xf32> to vector<8x64xf32>
    %cst_137 = arith.constant 1.000000e+00 : f32
    %389 = vector.broadcast %cst_137 : f32 to vector<8x64xf32>
    %390 = arith.addf %388, %389 : vector<8x64xf32>
    %cst_138 = arith.constant 5.000000e-01 : f32
    %391 = vector.broadcast %cst_138 : f32 to vector<8x64xf32>
    %392 = arith.mulf %391, %390 : vector<8x64xf32>
    %393 = vector.extract_strided_slice %387 {offsets = [0, 64], sizes = [8, 64], strides = [1, 1]} : vector<8x256xf32> to vector<8x64xf32>
    %cst_139 = arith.constant 1.000000e+00 : f32
    %394 = vector.broadcast %cst_139 : f32 to vector<8x64xf32>
    %395 = arith.addf %393, %394 : vector<8x64xf32>
    %cst_140 = arith.constant 5.000000e-01 : f32
    %396 = vector.broadcast %cst_140 : f32 to vector<8x64xf32>
    %397 = arith.mulf %396, %395 : vector<8x64xf32>
    %398 = vector.extract_strided_slice %387 {offsets = [0, 128], sizes = [8, 64], strides = [1, 1]} : vector<8x256xf32> to vector<8x64xf32>
    %399 = vector.extract_strided_slice %387 {offsets = [0, 192], sizes = [8, 64], strides = [1, 1]} : vector<8x256xf32> to vector<8x64xf32>
    %cst_141 = arith.constant 1.000000e+00 : f32
    %400 = vector.broadcast %cst_141 : f32 to vector<8x64xf32>
    %401 = arith.addf %399, %400 : vector<8x64xf32>
    %cst_142 = arith.constant 5.000000e-01 : f32
    %402 = vector.broadcast %cst_142 : f32 to vector<8x64xf32>
    %403 = arith.mulf %402, %401 : vector<8x64xf32>
    %404 = arith.mulf %397, %346 : vector<8x64xf32>
    %405 = arith.mulf %392, %398 : vector<8x64xf32>
    %406 = arith.addf %404, %405 : vector<8x64xf32>
    %407 = math.tanh %406 : vector<8x64xf32>
    %408 = arith.mulf %403, %407 : vector<8x64xf32>
    %409 = arith.truncf %408 : vector<8x64xf32> to vector<8x64xbf16>
    %cst_143 = arith.constant dense<0.000000e+00> : vector<8x256xf32>
    %410 = tpu.matmul %409, %11, %cst_143 {dimension_numbers = #tpu.dot_dimension_numbers<[1], [0], [0], [1], [0, 0, 1, 1], [], []>} : vector<8x64xbf16>, vector<64x256xbf16>, vector<8x256xf32> -> vector<8x256xf32>
    %411 = arith.addf %378, %410 : vector<8x256xf32>
    %412 = arith.addf %411, %15 : vector<8x256xf32>
    %cst_144 = arith.constant 5.000000e-01 : f32
    %413 = vector.broadcast %cst_144 : f32 to vector<8x256xf32>
    %414 = arith.mulf %413, %412 : vector<8x256xf32>
    %415 = math.tanh %414 : vector<8x256xf32>
    %416 = vector.extract_strided_slice %415 {offsets = [0, 0], sizes = [8, 64], strides = [1, 1]} : vector<8x256xf32> to vector<8x64xf32>
    %cst_145 = arith.constant 1.000000e+00 : f32
    %417 = vector.broadcast %cst_145 : f32 to vector<8x64xf32>
    %418 = arith.addf %416, %417 : vector<8x64xf32>
    %cst_146 = arith.constant 5.000000e-01 : f32
    %419 = vector.broadcast %cst_146 : f32 to vector<8x64xf32>
    %420 = arith.mulf %419, %418 : vector<8x64xf32>
    %421 = vector.extract_strided_slice %415 {offsets = [0, 64], sizes = [8, 64], strides = [1, 1]} : vector<8x256xf32> to vector<8x64xf32>
    %cst_147 = arith.constant 1.000000e+00 : f32
    %422 = vector.broadcast %cst_147 : f32 to vector<8x64xf32>
    %423 = arith.addf %421, %422 : vector<8x64xf32>
    %cst_148 = arith.constant 5.000000e-01 : f32
    %424 = vector.broadcast %cst_148 : f32 to vector<8x64xf32>
    %425 = arith.mulf %424, %423 : vector<8x64xf32>
    %426 = vector.extract_strided_slice %415 {offsets = [0, 128], sizes = [8, 64], strides = [1, 1]} : vector<8x256xf32> to vector<8x64xf32>
    %427 = vector.extract_strided_slice %415 {offsets = [0, 192], sizes = [8, 64], strides = [1, 1]} : vector<8x256xf32> to vector<8x64xf32>
    %cst_149 = arith.constant 1.000000e+00 : f32
    %428 = vector.broadcast %cst_149 : f32 to vector<8x64xf32>
    %429 = arith.addf %427, %428 : vector<8x64xf32>
    %cst_150 = arith.constant 5.000000e-01 : f32
    %430 = vector.broadcast %cst_150 : f32 to vector<8x64xf32>
    %431 = arith.mulf %430, %429 : vector<8x64xf32>
    %432 = arith.mulf %425, %374 : vector<8x64xf32>
    %433 = arith.mulf %420, %426 : vector<8x64xf32>
    %434 = arith.addf %432, %433 : vector<8x64xf32>
    %435 = math.tanh %434 : vector<8x64xf32>
    %436 = arith.mulf %431, %435 : vector<8x64xf32>
    %c7_i32 = arith.constant 7 : i32
    %437 = arith.truncf %436 : vector<8x64xf32> to vector<8x64xbf16>
    %cst_151 = arith.constant dense<0.000000e+00> : vector<8x256xf32>
    %438 = tpu.matmul %437, %12, %cst_151 {dimension_numbers = #tpu.dot_dimension_numbers<[1], [0], [0], [1], [0, 0, 1, 1], [], []>} : vector<8x64xbf16>, vector<64x256xbf16>, vector<8x256xf32> -> vector<8x256xf32>
    %439 = arith.index_cast %c7_i32 : i32 to index
    %c0_152 = arith.constant 0 : index
    %c0_153 = arith.constant 0 : index
    %440 = vector.load %arg11[%439, %c0_152, %c0_153] : memref<8x8x256xf32, #tpu.memory_space<vmem>>, vector<1x8x256xf32>
    %441 = vector.shape_cast %440 : vector<1x8x256xf32> to vector<8x256xf32>
    %442 = arith.truncf %408 : vector<8x64xf32> to vector<8x64xbf16>
    %cst_154 = arith.constant dense<0.000000e+00> : vector<8x256xf32>
    %443 = tpu.matmul %442, %10, %cst_154 {dimension_numbers = #tpu.dot_dimension_numbers<[1], [0], [0], [1], [0, 0, 1, 1], [], []>} : vector<8x64xbf16>, vector<64x256xbf16>, vector<8x256xf32> -> vector<8x256xf32>
    %444 = arith.addf %441, %443 : vector<8x256xf32>
    %cst_155 = arith.constant 5.000000e-01 : f32
    %445 = vector.broadcast %cst_155 : f32 to vector<8x256xf32>
    %446 = arith.mulf %445, %444 : vector<8x256xf32>
    %447 = math.tanh %446 : vector<8x256xf32>
    %448 = vector.extract_strided_slice %447 {offsets = [0, 0], sizes = [8, 64], strides = [1, 1]} : vector<8x256xf32> to vector<8x64xf32>
    %cst_156 = arith.constant 1.000000e+00 : f32
    %449 = vector.broadcast %cst_156 : f32 to vector<8x64xf32>
    %450 = arith.addf %448, %449 : vector<8x64xf32>
    %cst_157 = arith.constant 5.000000e-01 : f32
    %451 = vector.broadcast %cst_157 : f32 to vector<8x64xf32>
    %452 = arith.mulf %451, %450 : vector<8x64xf32>
    %453 = vector.extract_strided_slice %447 {offsets = [0, 64], sizes = [8, 64], strides = [1, 1]} : vector<8x256xf32> to vector<8x64xf32>
    %cst_158 = arith.constant 1.000000e+00 : f32
    %454 = vector.broadcast %cst_158 : f32 to vector<8x64xf32>
    %455 = arith.addf %453, %454 : vector<8x64xf32>
    %cst_159 = arith.constant 5.000000e-01 : f32
    %456 = vector.broadcast %cst_159 : f32 to vector<8x64xf32>
    %457 = arith.mulf %456, %455 : vector<8x64xf32>
    %458 = vector.extract_strided_slice %447 {offsets = [0, 128], sizes = [8, 64], strides = [1, 1]} : vector<8x256xf32> to vector<8x64xf32>
    %459 = vector.extract_strided_slice %447 {offsets = [0, 192], sizes = [8, 64], strides = [1, 1]} : vector<8x256xf32> to vector<8x64xf32>
    %cst_160 = arith.constant 1.000000e+00 : f32
    %460 = vector.broadcast %cst_160 : f32 to vector<8x64xf32>
    %461 = arith.addf %459, %460 : vector<8x64xf32>
    %cst_161 = arith.constant 5.000000e-01 : f32
    %462 = vector.broadcast %cst_161 : f32 to vector<8x64xf32>
    %463 = arith.mulf %462, %461 : vector<8x64xf32>
    %464 = arith.mulf %457, %406 : vector<8x64xf32>
    %465 = arith.mulf %452, %458 : vector<8x64xf32>
    %466 = arith.addf %464, %465 : vector<8x64xf32>
    %467 = math.tanh %466 : vector<8x64xf32>
    %468 = arith.mulf %463, %467 : vector<8x64xf32>
    %469 = arith.truncf %468 : vector<8x64xf32> to vector<8x64xbf16>
    %cst_162 = arith.constant dense<0.000000e+00> : vector<8x256xf32>
    %470 = tpu.matmul %469, %11, %cst_162 {dimension_numbers = #tpu.dot_dimension_numbers<[1], [0], [0], [1], [0, 0, 1, 1], [], []>} : vector<8x64xbf16>, vector<64x256xbf16>, vector<8x256xf32> -> vector<8x256xf32>
    %471 = arith.addf %438, %470 : vector<8x256xf32>
    %472 = arith.addf %471, %15 : vector<8x256xf32>
    %cst_163 = arith.constant 5.000000e-01 : f32
    %473 = vector.broadcast %cst_163 : f32 to vector<8x256xf32>
    %474 = arith.mulf %473, %472 : vector<8x256xf32>
    %475 = math.tanh %474 : vector<8x256xf32>
    %476 = vector.extract_strided_slice %475 {offsets = [0, 0], sizes = [8, 64], strides = [1, 1]} : vector<8x256xf32> to vector<8x64xf32>
    %cst_164 = arith.constant 1.000000e+00 : f32
    %477 = vector.broadcast %cst_164 : f32 to vector<8x64xf32>
    %478 = arith.addf %476, %477 : vector<8x64xf32>
    %cst_165 = arith.constant 5.000000e-01 : f32
    %479 = vector.broadcast %cst_165 : f32 to vector<8x64xf32>
    %480 = arith.mulf %479, %478 : vector<8x64xf32>
    %481 = vector.extract_strided_slice %475 {offsets = [0, 64], sizes = [8, 64], strides = [1, 1]} : vector<8x256xf32> to vector<8x64xf32>
    %cst_166 = arith.constant 1.000000e+00 : f32
    %482 = vector.broadcast %cst_166 : f32 to vector<8x64xf32>
    %483 = arith.addf %481, %482 : vector<8x64xf32>
    %cst_167 = arith.constant 5.000000e-01 : f32
    %484 = vector.broadcast %cst_167 : f32 to vector<8x64xf32>
    %485 = arith.mulf %484, %483 : vector<8x64xf32>
    %486 = vector.extract_strided_slice %475 {offsets = [0, 128], sizes = [8, 64], strides = [1, 1]} : vector<8x256xf32> to vector<8x64xf32>
    %487 = vector.extract_strided_slice %475 {offsets = [0, 192], sizes = [8, 64], strides = [1, 1]} : vector<8x256xf32> to vector<8x64xf32>
    %cst_168 = arith.constant 1.000000e+00 : f32
    %488 = vector.broadcast %cst_168 : f32 to vector<8x64xf32>
    %489 = arith.addf %487, %488 : vector<8x64xf32>
    %cst_169 = arith.constant 5.000000e-01 : f32
    %490 = vector.broadcast %cst_169 : f32 to vector<8x64xf32>
    %491 = arith.mulf %490, %489 : vector<8x64xf32>
    %492 = arith.mulf %485, %434 : vector<8x64xf32>
    %493 = arith.mulf %480, %486 : vector<8x64xf32>
    %494 = arith.addf %492, %493 : vector<8x64xf32>
    %495 = math.tanh %494 : vector<8x64xf32>
    %496 = arith.mulf %491, %495 : vector<8x64xf32>
    %c8_i32 = arith.constant 8 : i32
    %c0_170 = arith.constant 0 : index
    %c0_171 = arith.constant 0 : index
    %497 = vector.load %arg8[%c0_170, %c0_171] : memref<1x64xf32, #tpu.memory_space<vmem>>, vector<1x64xf32>
    %498 = vector.broadcast %497 : vector<1x64xf32> to vector<8x64xf32>
    %499 = arith.mulf %496, %498 : vector<8x64xf32>
    %cst_172 = arith.constant dense<0.000000e+00> : vector<8xf32>
    %500 = vector.multi_reduction <add>, %499, %cst_172 [1] : vector<8x64xf32> to vector<8xf32>
    %501 = vector.shape_cast %500 : vector<8xf32> to vector<8x1xf32>
    %c0_173 = arith.constant 0 : index
    %c0_174 = arith.constant 0 : index
    %502 = vector.load %arg9[%c0_173, %c0_174] : memref<1x1xf32, #tpu.memory_space<vmem>>, vector<1x1xf32>
    %503 = vector.broadcast %502 : vector<1x1xf32> to vector<8x1xf32>
    %504 = arith.addf %501, %503 : vector<8x1xf32>
    %cst_175 = arith.constant 5.000000e-01 : f32
    %505 = vector.broadcast %cst_175 : f32 to vector<8x1xf32>
    %506 = arith.mulf %505, %504 : vector<8x1xf32>
    %507 = math.tanh %506 : vector<8x1xf32>
    %cst_176 = arith.constant 1.000000e+00 : f32
    %508 = vector.broadcast %cst_176 : f32 to vector<8x1xf32>
    %509 = arith.addf %507, %508 : vector<8x1xf32>
    %cst_177 = arith.constant 5.000000e-01 : f32
    %510 = vector.broadcast %cst_177 : f32 to vector<8x1xf32>
    %511 = arith.mulf %510, %509 : vector<8x1xf32>
    %c0_178 = arith.constant 0 : index
    %c0_179 = arith.constant 0 : index
    %512 = vector.load %arg10[%c0_178, %c0_179] : memref<8x1xf32, #tpu.memory_space<vmem>>, vector<8x1xf32>
    tpu.vector_store %arg10[%c0_178, %c0_179], %511 {strides = array<i32>} : memref<8x1xf32, #tpu.memory_space<vmem>>, vector<8x1xf32>,
    return
  }
  func.func @transform_0(%arg0: i32) -> (i32, i32, i32) {
    %c0_i32 = arith.constant 0 : i32
    %c0_i32_0 = arith.constant 0 : i32
    %c0_i32_1 = arith.constant 0 : i32
    return %c0_i32, %arg0, %c0_i32_0 : i32, i32, i32
  }
  func.func @transform_1(%arg0: i32) -> (i32, i32) {
    %c0_i32 = arith.constant 0 : i32
    %c0_i32_0 = arith.constant 0 : i32
    %c0_i32_1 = arith.constant 0 : i32
    return %c0_i32, %c0_i32_0 : i32, i32
  }
  func.func @transform_2(%arg0: i32) -> (i32, i32) {
    %c0_i32 = arith.constant 0 : i32
    %c0_i32_0 = arith.constant 0 : i32
    %c0_i32_1 = arith.constant 0 : i32
    return %c0_i32, %c0_i32_0 : i32, i32
  }
  func.func @transform_3(%arg0: i32) -> (i32, i32) {
    %c0_i32 = arith.constant 0 : i32
    %c0_i32_0 = arith.constant 0 : i32
    %c0_i32_1 = arith.constant 0 : i32
    return %c0_i32, %c0_i32_0 : i32, i32
  }
  func.func @transform_4(%arg0: i32) -> (i32, i32) {
    %c0_i32 = arith.constant 0 : i32
    %c0_i32_0 = arith.constant 0 : i32
    %c0_i32_1 = arith.constant 0 : i32
    return %c0_i32, %c0_i32_0 : i32, i32
  }
  func.func @transform_5(%arg0: i32) -> (i32, i32) {
    %c0_i32 = arith.constant 0 : i32
    %c0_i32_0 = arith.constant 0 : i32
    %c0_i32_1 = arith.constant 0 : i32
    return %c0_i32, %c0_i32_0 : i32, i32
  }
  func.func @transform_6(%arg0: i32) -> (i32, i32) {
    %c0_i32 = arith.constant 0 : i32
    %c0_i32_0 = arith.constant 0 : i32
    %c0_i32_1 = arith.constant 0 : i32
    return %c0_i32, %c0_i32_0 : i32, i32
  }
  func.func @transform_7(%arg0: i32) -> (i32, i32) {
    %c0_i32 = arith.constant 0 : i32
    %c0_i32_0 = arith.constant 0 : i32
    %c0_i32_1 = arith.constant 0 : i32
    return %c0_i32, %c0_i32_0 : i32, i32
  }
  func.func @transform_8(%arg0: i32) -> (i32, i32) {
    %c0_i32 = arith.constant 0 : i32
    %c0_i32_0 = arith.constant 0 : i32
    %c0_i32_1 = arith.constant 0 : i32
    return %c0_i32, %c0_i32_0 : i32, i32
  }
  func.func @transform_9(%arg0: i32) -> (i32, i32) {
    %c0_i32 = arith.constant 0 : i32
    %c0_i32_0 = arith.constant 0 : i32
    return %arg0, %c0_i32 : i32, i32
  }
}

</mosaic_0001>

<bundles_post_ra>
// kernel: tpu_custom_call.1
= control target key start
LH: loop header
LB: loop body
LE: loop exit
PB: predicated region body
PF: predicated region fallthrough
CT: control target
= control target key end

     0   :  { %s2834_s0 = inlined_call_operand.hbm [shape: f32[8,8,23], index: 0, kind: input, shape index: {}]   ;;  %s2835_s1 = inlined_call_operand.hbm [shape: bf16[23,256], index: 1, kind: input, shape index: {}]   ;;  %s2836_s2 = inlined_call_operand.hbm [shape: bf16[64,256], index: 2, kind: input, shape index: {}]   ;;  %s2837_s3 = inlined_call_operand.vmem [shape: f32[1,256], index: 3, kind: input, shape index: {}]   ;;  %s2838_s4 = inlined_call_operand.hbm [shape: bf16[64,256], index: 4, kind: input, shape index: {}]   ;;  %s2839_s5 = inlined_call_operand.hbm [shape: bf16[64,256], index: 5, kind: input, shape index: {}]   ;;  %s2840_s6 = inlined_call_operand.vmem [shape: f32[1,256], index: 6, kind: input, shape index: {}]   ;;  %s2841_s7 = inlined_call_operand.vmem [shape: f32[1,64], index: 7, kind: input, shape index: {}]   ;;  %s2842_s8 = inlined_call_operand.<no memory space> [shape: f32[1,1], index: 8, kind: input, shape index: {}]   ;;  %s2843_s9 = inlined_call_operand.vmem [shape: f32[8,1], index: 9, kind: output, shape index: {}]  }
   0x1   :  { %v14_v0 = vstv %s2842_s8 }
   0x2   :  { %15 = vst [vmem:[#allocation3] sm:$0x1] %v14_v0 }
   0x3   :  { %16 = vsyncpa [#allocation5], 0 }
   0x4   :  { %17 = vsyncpa [#allocation7], 0 }
   0x5   :  { %18 = vsyncpa [#allocation10], 0  ;;  %s2206_s11 = smov [#allocation6]   ;;  %s2207_s13 = smov [#allocation9]  }
   0x6   :  { %s36_s12 = sshll.u32 %s2206_s11, 4  ;;  %s62_s14 = sshll.u32 %s2207_s13, 4  ;;  %s37_s12 = int_to_ptr.vmem [resolvable:$true] %s36_s12  ;;  %s63_s14 = int_to_ptr.vmem [resolvable:$true] %s62_s14 }
   0x7   :  { %s2108_s15 = scalar_lea.vmem %s37_s12, 384  ;;  %p2113_p1 = scmp.lt.s32.totalorder %s37_s12, %s37_s12 }
   0x8   :  { %p2109_p0 = scmp.ne.s32.totalorder %s37_s12, %s2108_s15  ;;  %p2114_p2 = scmp.lt.s32.totalorder %s2108_s15, %s2108_s15 }
   0xa   :  { %p2115_p3 = por %p2114_p2, %p2113_p1 }
   0xc   :  { %p2116_p4 = pnand %p2115_p3, %p2109_p0 }
   0xe   :  { %2119 = shalt.err (!%p2116_p4)
}
   0xf   :  { %s2208_s16 = smov 128   ;;  %s2209_s17 = smov 8  }
  0x10   :  { %42 = dma.hbm_to_vmem [thread:$0]  %s2835_s1, 384, %s37_s12, [#allocation7], %s2208_s16, %s2208_s16, %s2209_s17  }
  0x11   :  { %s2128_s19 = scalar_lea.vmem %s63_s14, 1024  ;;  %p2133_p6 = scmp.lt.s32.totalorder %s63_s14, %s63_s14 }
  0x12   :  { %p2129_p5 = scmp.ne.s32.totalorder %s63_s14, %s2128_s19  ;;  %p2134_p7 = scmp.lt.s32.totalorder %s2128_s19, %s2128_s19 }
  0x14   :  { %p2135_p8 = por %p2134_p7, %p2133_p6 }
  0x16   :  { %p2136_p9 = pnand %p2135_p8, %p2129_p5 }
  0x18   :  { %2139 = shalt.err (!%p2136_p9)
}
  0x19   :  { %68 = dma.hbm_to_vmem [thread:$0]  %s2838_s4, 1024, %s63_s14, [#allocation10], %s2208_s16, %s2208_s16, %s2209_s17  }
  0x1a   :  { %s2210_s22 = smov [#allocation4]   ;;  %s2211_s24 = smov [#allocation8]  }
  0x1b   :  { %s24_s23 = sshll.u32 %s2210_s22, 4  ;;  %s48_s25 = sshll.u32 %s2211_s24, 4  ;;  %s25_s23 = int_to_ptr.vmem [resolvable:$true] %s24_s23  ;;  %s49_s25 = int_to_ptr.vmem [resolvable:$true] %s48_s25 }
  0x1c   :  { %s2148_s1 = scalar_lea.vmem %s25_s23, 1024  ;;  %p2153_p11 = scmp.lt.s32.totalorder %s25_s23, %s25_s23 }
  0x1d   :  { %p2149_p10 = scmp.ne.s32.totalorder %s25_s23, %s2148_s1  ;;  %p2154_p12 = scmp.lt.s32.totalorder %s2148_s1, %s2148_s1 }
  0x1f   :  { %p2155_p13 = por %p2154_p12, %p2153_p11 }
  0x21   :  { %p2156_p0 = pnand %p2155_p13, %p2149_p10 }
  0x23   :  { %2159 = shalt.err (!%p2156_p0)
}
  0x24   :  { %30 = dma.hbm_to_vmem [thread:$0]  %s2834_s0, 1024, %s25_s23, [#allocation5], %s2208_s16, %s2208_s16, %s2209_s17  }
  0x25   :  { %s2168_s4 = scalar_lea.vmem %s49_s25, 1024  ;;  %p2173_p2 = scmp.lt.s32.totalorder %s49_s25, %s49_s25 }
  0x26   :  { %p2169_p1 = scmp.ne.s32.totalorder %s49_s25, %s2168_s4  ;;  %p2174_p3 = scmp.lt.s32.totalorder %s2168_s4, %s2168_s4 }
  0x28   :  { %p2175_p4 = por %p2174_p3, %p2173_p2 }
  0x2a   :  { %p2176_p5 = pnand %p2175_p4, %p2169_p1 }
  0x2c   :  { %2179 = shalt.err (!%p2176_p5)
}
  0x2d   :  { %54 = dma.hbm_to_vmem [thread:$0]  %s2836_s2, 1024, %s49_s25, [#allocation7], %s2208_s16, %s2208_s16, %s2209_s17  }
  0x2e   :  { %s2212_s30 = smov [#allocation11]  }
  0x2f   :  { %s74_s10 = sshll.u32 %s2212_s30, 4  ;;  %s75_s10 = int_to_ptr.vmem [resolvable:$true] %s74_s10 }
  0x30   :  { %s2188_s11 = scalar_lea.vmem %s75_s10, 1024  ;;  %p2193_p7 = scmp.lt.s32.totalorder %s75_s10, %s75_s10 }
  0x31   :  { %p2189_p6 = scmp.ne.s32.totalorder %s75_s10, %s2188_s11  ;;  %p2194_p8 = scmp.lt.s32.totalorder %s2188_s11, %s2188_s11 }
  0x33   :  { %p2195_p9 = por %p2194_p8, %p2193_p7 }
  0x35   :  { %p2196_p10 = pnand %p2195_p9, %p2189_p6 }
  0x37   :  { %2199 = shalt.err (!%p2196_p10)
}
  0x38   :  { %80 = dma.hbm_to_vmem [thread:$0]  %s2839_s5, 1024, %s75_s10, [#allocation10], %s2208_s16, %s2208_s16, %s2209_s17  }
  0x39   :  { %2200 = dma.done.wait [#allocation5], 1024  }
  0x3a   :  { %2201 = vsyncadd [#allocation5], 4294966272 }
  0x3b   :  { %2202 = dma.done.wait [#allocation7], 1408  }
  0x3c   :  { %2203 = vsyncadd [#allocation7], 4294965888 }
  0x3d   :  { %2204 = dma.done.wait [#allocation10], 2048  }
  0x3e   :  { %2205 = vsyncadd [#allocation10], 4294965248  ;;  %v2213_v1 = vmov 0   ;;  %vm158_vm0 = vcmask 1042432   ;;  %vm159_vm1 = vcmask 1043456   ;;  %v2214_v2 = vmov 65535  }
  0x3f   :  { %200 = vmatprep.mubr.bf16.mxu0 %v2213_v1  ;;  %371 = vmatprep.mubr.bf16.mxu1 %v2213_v1  ;;  %v160_v3 = vsel %vm158_vm0, 4294967295, %v2214_v2  ;;  %v2301_v4 = vld [vmem:[#allocation8 + $0x34] ss:$8 sps:$4 sm:$0xff]   ;;  %v2303_v5 = vld [vmem:[#allocation8 + $0x30] ss:$8 sps:$4 sm:$0xff]   ;;  %v103_v18 = vld [vmem:[#allocation4] sm:$0xff]  ;;  %v120_v23 = vlaneseq }
  0x40   :  { %v117_v6 = vld [vmem:[#allocation6 + $0x10] sm:$0xff]  ;;  %v161_v7 = vsel %vm159_vm1, %v160_v3, 0  ;;  %347 = vmatprep.subr.bf16.mxu1 %v2301_v4  ;;  %v2306_v10 = vld [vmem:[#allocation8 + $0x24] ss:$8 sps:$4 sm:$0xff]   ;;  %v2309_v11 = vld [vmem:[#allocation8 + $0x20] ss:$8 sps:$4 sm:$0xff]  }
  0x41   :  { %v1874_v8 = vcombine.high %v117_v6, %v117_v6  ;;  %v1873_v9 = vcombine.low %v117_v6, %v117_v6  ;;  %348 = vmatpush1.bf16.msra.mxu1 %v2303_v5  ;;  %v1945_v14 = vld [vmem:[#allocation6 + $0x4] ss:$8 sps:$4 sm:$0xff]   ;;  %v1947_v15 = vld [vmem:[#allocation6] ss:$8 sps:$4 sm:$0xff]   ;;  %vm145_vm2 = vcmask 187392   ;;  %v2329_v24 = vshrl.u32 %v120_v23, 7 }
  0x42   :  { %349 = vmatprep.subr.bf16.mxu1 %v2306_v10  ;;  %v2312_v16 = vld [vmem:[#allocation8 + $0x14] ss:$8 sps:$4 sm:$0xff]   ;;  %v2314_v17 = vld [vmem:[#allocation8 + $0x10] ss:$8 sps:$4 sm:$0xff]   ;;  %v2317_v20 = vld [vmem:[#allocation8 + $0x4] ss:$8 sps:$4 sm:$0xff]  }
  0x43   :  { %v166_v12 = vand.u32 %v1874_v8, %v161_v7  ;;  %v163_v13 = vand.u32 %v1873_v9, %v161_v7  ;;  %v104_v19 = vld [vmem:[#allocation4 + $0x8] sm:$0xff]  ;;  %v2320_v21 = vld [vmem:[#allocation8] ss:$8 sps:$4 sm:$0xff]   ;;  %v122_v25 = vsub.s32 0, %v2329_v24  ;;  %v126_v28 = vsub.s32 1, %v2329_v24  ;;  %v105_v47 = vld [vmem:[#allocation4 + $0x10] sm:$0xff] }
  0x44   :  { %v111_v22 = vpack.c.bf16 %v104_v19, %v103_v18  ;;  %v118_v26 = vld [vmem:[%s2837_s3] sm:$0x3]  ;;  %s2215_s3 = smov 64   ;;  %v2353_v49 = vld [vmem:[#allocation9 + $0x34] ss:$8 sps:$4 sm:$0xff]   ;;  %vm335_vm3 = vcmask 523264  }
  0x45   :  { %180 = vmatprep.subr.bf16.mxu0 %v166_v12  ;;  %350 = vmatpush1.bf16.msra.mxu1 %v2309_v11  ;;  %v2337_v27 = vrot.slane %v118_v26, %v122_v25  ;;  %v2343_v31 = vrot.slane %v118_v26, %v126_v28  ;;  %v106_v48 = vld [vmem:[#allocation4 + $0x18] sm:$0xff]  ;;  %v2355_v51 = vld [vmem:[#allocation9 + $0x30] ss:$8 sps:$4 sm:$0xff]   ;;  %v2358_v52 = vld [vmem:[#allocation11 + $0x34] ss:$8 sps:$4 sm:$0xff]   ;;  %vm1862_vm4 = vcmask 7168  }
  0x46   :  { %181 = vmatpush1.bf16.msra.mxu0 %v163_v13  ;;  %351 = vmatprep.subr.bf16.mxu1 %v2312_v16  ;;  %v112_v50 = vpack.c.bf16 %v106_v48, %v105_v47  ;;  %v2360_v53 = vld [vmem:[#allocation11 + $0x30] ss:$8 sps:$4 sm:$0xff]   ;;  %v2362_v54 = vld [vmem:[#allocation9 + $0x24] ss:$8 sps:$4 sm:$0xff]   ;;  %v2366_v55 = vld [vmem:[#allocation9 + $0x20] ss:$8 sps:$4 sm:$0xff]  }
  0x47   :  { %182 = vmatprep.subr.bf16.mxu0 %v1945_v14  ;;  %v2368_v56 = vld [vmem:[#allocation11 + $0x24] ss:$8 sps:$4 sm:$0xff]   ;;  %v108_v58 = vld [vmem:[#allocation4 + $0x28] sm:$0xff]  ;;  %v2376_v60 = vld [vmem:[#allocation11 + $0x20] ss:$8 sps:$4 sm:$0xff]  }
  0x48   :  { %v107_v57 = vld [vmem:[#allocation4 + $0x20] sm:$0xff]  ;;  %v2372_v59 = vld [vmem:[#allocation9 + $0x14] ss:$8 sps:$4 sm:$0xff]   ;;  %v2382_v63 = vld [vmem:[#allocation9 + $0x10] ss:$8 sps:$4 sm:$0xff]  }
  0x49   :  { %352 = vmatpush1.bf16.msra.mxu1 %v2314_v17  ;;  %v2379_v61 = vld [vmem:[#allocation11 + $0x14] ss:$8 sps:$4 sm:$0xff]   ;;  %v113_v62 = vpack.c.bf16 %v108_v58, %v107_v57  ;;  %v2385_v0 = vld [vmem:[#allocation9 + $0x4] ss:$8 sps:$4 sm:$0xff]   ;;  %v2388_v2 = vld [vmem:[#allocation11 + $0x10] ss:$8 sps:$4 sm:$0xff]  }
  0x4a   :  { %183 = vmatpush1.bf16.msra.mxu0 %v1947_v15  ;;  %353 = vmatprep.subr.bf16.mxu1 %v2317_v20  ;;  %v2391_v3 = vld [vmem:[#allocation11 + $0x4] ss:$8 sps:$4 sm:$0xff]   ;;  %v2395_v6 = vld [vmem:[#allocation9] ss:$8 sps:$4 sm:$0xff]   ;;  %v109_v7 = vld [vmem:[#allocation4 + $0x30] sm:$0xff] }
  0x4b   :  { %535 = vmatprep.subr.bf16.mxu0 %v2358_v52  ;;  %v110_v8 = vld [vmem:[#allocation4 + $0x38] sm:$0xff] }
  0x4c   :  { %v2400_v9 = vld [vmem:[#allocation11] ss:$8 sps:$4 sm:$0xff]   ;;  %v114_v12 = vpack.c.bf16 %v110_v8, %v109_v7 }
  0x4d   :  { %1875 = vmatmul.mubr.msk.bf16.vlgmr.msra.gmra.mxu0 %vm145_vm2, %v111_v22  ;;  %354 = vmatpush1.bf16.msra.mxu1 %v2320_v21  ;;  %v281_v58 = vld [vmem:[%s2840_s6] sm:$0x3] }
  0x4e   :  { %210 = vmatprep.mubr.bf16.mxu0 %v2213_v1  ;;  %454 = vmatprep.subr.bf16.mxu1 %v2353_v49  ;;  %v2474_v8 = vrot.slane %v281_v58, %v122_v25 }
  0x4f   :  { %536 = vmatpush1.bf16.msra.mxu0 %v2360_v53 }
  0x50   :  { %372 = vmatmul.mubr.bf16.vlgmr.msra.gmra.mxu1 %v2213_v1  ;;  %537 = vmatprep.subr.bf16.mxu0 %v2368_v56 }
  0x51   :  { %478 = vmatprep.mubr.bf16.mxu1 %v2213_v1  ;;  %455 = vmatpush1.bf16.msra.mxu1 %v2355_v51 }
  0x52   :  { %456 = vmatprep.subr.bf16.mxu1 %v2362_v54 }
  0x53   :  { %538 = vmatpush1.bf16.msra.mxu0 %v2376_v60 }
  0x54   :  { %539 = vmatprep.subr.bf16.mxu0 %v2379_v61 }
  0x55   :  { %1876 = vmatmul.mubr.msk.bf16.gmra.mxu0 %vm145_vm2, %v112_v50  ;;  %457 = vmatpush1.bf16.msra.mxu1 %v2366_v55 }
  0x56   :  { %220 = vmatprep.mubr.bf16.mxu0 %v2213_v1  ;;  %458 = vmatprep.subr.bf16.mxu1 %v2372_v59 }
  0x57   :  { %540 = vmatpush1.bf16.msra.mxu0 %v2388_v2 }
  0x58   :  { %541 = vmatprep.subr.bf16.mxu0 %v2391_v3 }
  0x59   :  { %459 = vmatpush1.bf16.msra.mxu1 %v2382_v63 }
  0x5a   :  { %460 = vmatprep.subr.bf16.mxu1 %v2385_v0 }
  0x5b   :  { %542 = vmatpush1.bf16.msra.mxu0 %v2400_v9 }
  0x5c   :  { %666 = vmatprep.subr.bf16.mxu0 %v2353_v49 }
  0x5d   :  { %1877 = vmatmul.mubr.msk.bf16.gmra.mxu0 %vm145_vm2, %v113_v62  ;;  %461 = vmatpush1.bf16.msra.mxu1 %v2395_v6 }
  0x5e   :  { %230 = vmatprep.mubr.bf16.mxu0 %v2213_v1  ;;  %599 = vmatprep.subr.bf16.mxu1 %v2301_v4 }
  0x65   :  { %1878 = vmatmul.mubr.msk.bf16.gmra.mxu0 %vm145_vm2, %v114_v12 }
  0x66   :  { %559 = vmatprep.mubr.bf16.mxu0 %v2213_v1 }
  0x6d   :  { %560 = vmatmul.mubr.bf16.vlgmr.msra.gmra.mxu0 %v2213_v1 }
  0x6e   :  { %667 = vmatpush1.bf16.msra.mxu0 %v2355_v51  ;;  %690 = vmatprep.mubr.bf16.mxu0 %v2213_v1 }
  0x6f   :  { %668 = vmatprep.subr.bf16.mxu0 %v2362_v54 }
  0x72   :  { %669 = vmatpush1.bf16.msra.mxu0 %v2366_v55 }
  0x73   :  { %670 = vmatprep.subr.bf16.mxu0 %v2372_v59 }
  0x76   :  { %671 = vmatpush1.bf16.msra.mxu0 %v2382_v63 }
  0x77   :  { %672 = vmatprep.subr.bf16.mxu0 %v2385_v0 }
  0x7a   :  { %673 = vmatpush1.bf16.msra.mxu0 %v2395_v6 }
  0x7b   :  { %777 = vmatprep.subr.bf16.mxu0 %v2301_v4 }
 0x10d   :  { %v202_v29 = vpop.f32.mrf.mxu0 }
 0x10e   :  { %v203_v30 = vadd.f32 %v202_v29, %v2337_v27 }
 0x10f   :  { %v204_v32 = vpop.f32.mrf.mxu0 }
 0x110   :  { %v373_v33 = vpop.f32.mrf.mxu1  ;;  %v205_v34 = vadd.f32 %v204_v32, %v2343_v31 }
 0x111   :  { %v380_v35 = vadd.f32 %v373_v33, %v203_v30  ;;  %v206_v30 = vpop.f32.mrf.mxu0 }
 0x112   :  { %v375_v36 = vpop.f32.mrf.mxu1 }
 0x113   :  { %v382_v37 = vmul.f32 0.5, %v380_v35  ;;  %v381_v38 = vadd.f32 %v375_v36, %v205_v34  ;;  %v208_v32 = vpop.f32.mrf.mxu0 }
 0x114   :  { %v377_v39 = vpop.f32.mrf.mxu1 }
 0x115   :  { %1978 = vtanh.f32 %v382_v37  ;;  %v383_v40 = vmul.f32 0.5, %v381_v38  ;;  %v2436_v33 = vpop.f32.mrf.mxu0 }
 0x116   :  { %v378_v41 = vpop.f32.mrf.mxu1 }
 0x117   :  { %1980 = vtanh.f32 %v383_v40  ;;  %v2441_v34 = vpop.f32.mrf.mxu0 }
 0x119   :  { %v2445_v35 = vpop.f32.mrf.mxu0 }
 0x11b   :  { %v2449_v36 = vpop.f32.mrf.mxu0 }
 0x11d   :  { %v2453_v37 = vpop.f32.mrf.mxu0 }
 0x11f   :  { %v2455_v38 = vpop.f32.mrf.mxu0 }
 0x121   :  { %v2457_v39 = vpop.f32.mrf.mxu0 }
 0x122   :  { %v1979_v42 = vpop.eup %1978 }
 0x123   :  { %v386_v43 = vadd.f32 1.0, %v1979_v42  ;;  %v2459_v40 = vpop.f32.mrf.mxu0 }
 0x124   :  { %v2348_v45 = vpop.eup %1980 }
 0x125   :  { %v2346_v44 = vmul.f32 0.5, %v386_v43  ;;  %v388_v18 = vadd.f32 1.0, %v2348_v45  ;;  %v2461_v41 = vpop.f32.mrf.mxu0 }
 0x127   :  { %v391_v46 = vmul.f32 %v2348_v45, %v2346_v44  ;;  %v390_v13 = vmul.f32 0.0, %v2346_v44  ;;  %v389_v19 = vmul.f32 0.5, %v388_v18  ;;  %v2463_v42 = vpop.f32.mrf.mxu0 }
 0x129   :  { %393 = vrot.lane.b32.xlu0 %v391_v46, %s2215_s3  ;;  %v2465_v43 = vpop.f32.mrf.mxu0 }
 0x12b   :  { %v2467_v44 = vpop.f32.mrf.mxu0 }
 0x12d   :  { %v561_v45 = vpop.f32.mrf.mxu0 }
 0x12f   :  { %v563_v46 = vpop.f32.mrf.mxu0 }
 0x131   :  { %v565_v47 = vpop.f32.mrf.mxu0 }
 0x133   :  { %v566_v48 = vpop.f32.mrf.mxu0 }
 0x19b   :  { %v394_v14 = vpop.permute.xlu0 %393 }
 0x19c   :  { %v2420_v15 = vadd.f32 %v394_v14, %v390_v13  ;;  %v207_v14 = vadd.f32 %v206_v30, %v2337_v27 }
 0x19e   :  { %1982 = vtanh.f32 %v2420_v15 }
 0x1ab   :  { %v1983_v22 = vpop.eup %1982 }
 0x1ac   :  { %v398_v23 = vmul.f32 %v1983_v22, %v389_v19  ;;  %v209_v22 = vadd.f32 %v208_v32, %v2343_v31 }
 0x1ae   :  { %v399_v26 = vpack.c.bf16 %v398_v23, %v398_v23  ;;  %v2481_v23 = vrot.slane %v281_v58, %v126_v28 }
 0x1b0   :  { %401 = vrot.lane.b32.xlu0 %v399_v26, %s2215_s3 }
 0x222   :  { %v402_v29 = vpop.permute.xlu0 %401 }
 0x223   :  { %1895 = vmatmul.mubr.msk.bf16.vlgmr.msra.gmra.mxu1 %vm335_vm3, %v402_v29 }
 0x224   :  { %600 = vmatpush1.bf16.msra.mxu1 %v2303_v5  ;;  %623 = vmatprep.mubr.bf16.mxu1 %v2213_v1 }
 0x225   :  { %601 = vmatprep.subr.bf16.mxu1 %v2306_v10 }
 0x228   :  { %602 = vmatpush1.bf16.msra.mxu1 %v2309_v11 }
 0x229   :  { %603 = vmatprep.subr.bf16.mxu1 %v2312_v16 }
 0x22c   :  { %604 = vmatpush1.bf16.msra.mxu1 %v2314_v17 }
 0x22d   :  { %605 = vmatprep.subr.bf16.mxu1 %v2317_v20 }
 0x230   :  { %606 = vmatpush1.bf16.msra.mxu1 %v2320_v21 }
 0x231   :  { %713 = vmatprep.subr.bf16.mxu1 %v2358_v52 }
 0x233   :  { %1904 = vmatmul.mubr.msk.bf16.vlgmr.msra.gmra.mxu1 %vm335_vm3, %v402_v29 }
 0x234   :  { %714 = vmatpush1.bf16.msra.mxu1 %v2360_v53  ;;  %737 = vmatprep.mubr.bf16.mxu1 %v2213_v1 }
 0x235   :  { %715 = vmatprep.subr.bf16.mxu1 %v2368_v56 }
 0x238   :  { %716 = vmatpush1.bf16.msra.mxu1 %v2376_v60 }
 0x239   :  { %717 = vmatprep.subr.bf16.mxu1 %v2379_v61 }
 0x23c   :  { %718 = vmatpush1.bf16.msra.mxu1 %v2388_v2 }
 0x23d   :  { %719 = vmatprep.subr.bf16.mxu1 %v2391_v3 }
 0x240   :  { %720 = vmatpush1.bf16.msra.mxu1 %v2400_v9 }
 0x241   :  { %844 = vmatprep.subr.bf16.mxu1 %v2353_v49 }
 0x2e3   :  { %v480_v50 = vpop.f32.mrf.mxu1 }
 0x2e4   :  { %v562_v12 = vadd.f32 %v561_v45, %v480_v50 }
 0x2e5   :  { %v482_v57 = vpop.f32.mrf.mxu1 }
 0x2e6   :  { %v568_v13 = vadd.f32 %v562_v12, %v2474_v8  ;;  %v564_v26 = vadd.f32 %v563_v46, %v482_v57 }
 0x2e7   :  { %v484_v62 = vpop.f32.mrf.mxu1 }
 0x2e8   :  { %v570_v18 = vmul.f32 0.5, %v568_v13  ;;  %v569_v45 = vadd.f32 %v564_v26, %v2481_v23 }
 0x2e9   :  { %v485_v7 = vpop.f32.mrf.mxu1 }
 0x2ea   :  { %1984 = vtanh.f32 %v570_v18  ;;  %v571_v7 = vmul.f32 0.5, %v569_v45 }
 0x2f3   :  { %v625_v19 = vpop.f32.mrf.mxu1 }
 0x2f4   :  { %v632_v29 = vadd.f32 %v625_v19, %v207_v14 }
 0x2f5   :  { %v627_v47 = vpop.f32.mrf.mxu1 }
 0x2f6   :  { %v634_v48 = vmul.f32 0.5, %v632_v29  ;;  %v633_v25 = vadd.f32 %v627_v47, %v209_v22 }
 0x2f7   :  { %v629_v62 = vpop.f32.mrf.mxu1  ;;  %v1985_v32 = vpop.eup %1984 }
 0x2f8   :  { %1986 = vtanh.f32 %v634_v48  ;;  %v635_v50 = vmul.f32 0.5, %v633_v25  ;;  %v574_v28 = vadd.f32 1.0, %v1985_v32 }
 0x2f9   :  { %v630_v30 = vpop.f32.mrf.mxu1 }
 0x2fa   :  { %1988 = vtanh.f32 %v635_v50  ;;  %v575_v13 = vmul.f32 0.5, %v574_v28 }
 0x2fb   :  { %1990 = vtanh.f32 %v571_v7 }
 0x2fc   :  { %v578_v29 = vmul.f32 0.0, %v575_v13 }
 0x305   :  { %v1987_v12 = vpop.eup %1986 }
 0x306   :  { %v638_v24 = vadd.f32 1.0, %v1987_v12 }
 0x307   :  { %v1989_v46 = vpop.eup %1988 }
 0x308   :  { %v639_v58 = vmul.f32 0.5, %v638_v24  ;;  %v1991_v14 = vpop.eup %1990  ;;  %v640_v25 = vadd.f32 1.0, %v1989_v46 }
 0x309   :  { %v579_v18 = vmul.f32 %v1991_v14, %v575_v13  ;;  %v576_v45 = vadd.f32 1.0, %v1991_v14 }
 0x30a   :  { %v643_v57 = vmul.f32 %v1989_v46, %v639_v58  ;;  %v642_v19 = vmul.f32 %v639_v58, %v2420_v15  ;;  %v641_v62 = vmul.f32 0.5, %v640_v25 }
 0x30b   :  { %v577_v32 = vmul.f32 0.5, %v576_v45 }
 0x30c   :  { %645 = vrot.lane.b32.xlu1 %v643_v57, %s2215_s3 }
 0x310   :  { %581 = vrot.lane.b32.xlu1 %v579_v18, %s2215_s3 }
 0x37e   :  { %v646_v22 = vpop.permute.xlu1 %645 }
 0x37f   :  { %v2487_v26 = vadd.f32 %v646_v22, %v642_v19 }
 0x381   :  { %1992 = vtanh.f32 %v2487_v26 }
 0x382   :  { %v582_v47 = vpop.permute.xlu1 %581 }
 0x383   :  { %v2490_v48 = vadd.f32 %v582_v47, %v578_v29 }
 0x385   :  { %1994 = vtanh.f32 %v2490_v48 }
 0x38e   :  { %v1993_v50 = vpop.eup %1992 }
 0x38f   :  { %v650_v30 = vmul.f32 %v1993_v50, %v641_v62 }
 0x391   :  { %v651_v7 = vpack.c.bf16 %v650_v30, %v650_v30 }
 0x392   :  { %v1995_v12 = vpop.eup %1994 }
 0x393   :  { %653 = vrot.lane.b32.xlu0 %v651_v7, %s2215_s3  ;;  %v586_v15 = vmul.f32 %v1995_v12, %v577_v32  ;;  %v213_v7 = vadd.f32 %v2436_v33, %v2337_v27  ;;  %v215_v12 = vadd.f32 %v2441_v34, %v2343_v31 }
 0x395   :  { %v587_v24 = vpack.c.bf16 %v586_v15, %v586_v15 }
 0x397   :  { %700 = vrot.lane.b32.xlu1 %v587_v24, %s2215_s3 }
 0x405   :  { %v654_v28 = vpop.permute.xlu0 %653 }
 0x406   :  { %1905 = vmatmul.mubr.msk.bf16.vlgmr.msra.gmra.mxu0 %vm335_vm3, %v654_v28 }
 0x407   :  { %778 = vmatpush1.bf16.msra.mxu0 %v2303_v5  ;;  %801 = vmatprep.mubr.bf16.mxu0 %v2213_v1 }
 0x408   :  { %779 = vmatprep.subr.bf16.mxu0 %v2306_v10 }
 0x409   :  { %v701_v58 = vpop.permute.xlu1 %700 }
 0x40a   :  { %1906 = vmatmul.mubr.msk.bf16.vlgmr.msra.gmra.mxu1 %vm335_vm3, %v701_v58 }
 0x40b   :  { %780 = vmatpush1.bf16.msra.mxu0 %v2309_v11  ;;  %845 = vmatpush1.bf16.msra.mxu1 %v2355_v51 }
 0x40c   :  { %781 = vmatprep.subr.bf16.mxu0 %v2312_v16  ;;  %846 = vmatprep.subr.bf16.mxu1 %v2362_v54 }
 0x40d   :  { %868 = vmatprep.mubr.bf16.mxu1 %v2213_v1 }
 0x40f   :  { %782 = vmatpush1.bf16.msra.mxu0 %v2314_v17  ;;  %847 = vmatpush1.bf16.msra.mxu1 %v2366_v55 }
 0x410   :  { %783 = vmatprep.subr.bf16.mxu0 %v2317_v20  ;;  %848 = vmatprep.subr.bf16.mxu1 %v2372_v59 }
 0x413   :  { %784 = vmatpush1.bf16.msra.mxu0 %v2320_v21  ;;  %849 = vmatpush1.bf16.msra.mxu1 %v2382_v63 }
 0x414   :  { %891 = vmatprep.subr.bf16.mxu0 %v2358_v52  ;;  %850 = vmatprep.subr.bf16.mxu1 %v2385_v0 }
 0x416   :  { %1907 = vmatmul.mubr.msk.bf16.vlgmr.msra.gmra.mxu0 %vm335_vm3, %v654_v28 }
 0x417   :  { %892 = vmatpush1.bf16.msra.mxu0 %v2360_v53  ;;  %915 = vmatprep.mubr.bf16.mxu0 %v2213_v1 }
 0x418   :  { %893 = vmatprep.subr.bf16.mxu0 %v2368_v56  ;;  %851 = vmatpush1.bf16.msra.mxu1 %v2395_v6 }
 0x419   :  { %955 = vmatprep.subr.bf16.mxu1 %v2301_v4 }
 0x41b   :  { %894 = vmatpush1.bf16.msra.mxu0 %v2376_v60 }
 0x41c   :  { %895 = vmatprep.subr.bf16.mxu0 %v2379_v61 }
 0x41f   :  { %896 = vmatpush1.bf16.msra.mxu0 %v2388_v2 }
 0x420   :  { %897 = vmatprep.subr.bf16.mxu0 %v2391_v3 }
 0x423   :  { %898 = vmatpush1.bf16.msra.mxu0 %v2400_v9 }
 0x424   :  { %1022 = vmatprep.subr.bf16.mxu0 %v2353_v49 }
 0x4c6   :  { %v692_v46 = vpop.f32.mrf.mxu0 }
 0x4c8   :  { %v694_v57 = vpop.f32.mrf.mxu0 }
 0x4ca   :  { %v696_v13 = vpop.f32.mrf.mxu0  ;;  %v739_v14 = vpop.f32.mrf.mxu1 }
 0x4cb   :  { %v740_v18 = vadd.f32 %v739_v14, %v692_v46 }
 0x4cc   :  { %v697_v19 = vpop.f32.mrf.mxu0  ;;  %v741_v22 = vpop.f32.mrf.mxu1 }
 0x4cd   :  { %v746_v29 = vadd.f32 %v740_v18, %v2474_v8  ;;  %v742_v47 = vadd.f32 %v741_v22, %v694_v57 }
 0x4ce   :  { %v743_v25 = vpop.f32.mrf.mxu1 }
 0x4cf   :  { %v748_v62 = vmul.f32 0.5, %v746_v29  ;;  %v747_v45 = vadd.f32 %v742_v47, %v2481_v23 }
 0x4d0   :  { %v744_v50 = vpop.f32.mrf.mxu1 }
 0x4d1   :  { %1996 = vtanh.f32 %v748_v62  ;;  %v749_v30 = vmul.f32 0.5, %v747_v45 }
 0x4d3   :  { %1998 = vtanh.f32 %v749_v30 }
 0x4d6   :  { %v803_v32 = vpop.f32.mrf.mxu0 }
 0x4d7   :  { %v810_v15 = vadd.f32 %v803_v32, %v213_v7 }
 0x4d8   :  { %v805_v24 = vpop.f32.mrf.mxu0 }
 0x4d9   :  { %v812_v28 = vmul.f32 0.5, %v810_v15  ;;  %v811_v58 = vadd.f32 %v805_v24, %v215_v12 }
 0x4da   :  { %v807_v46 = vpop.f32.mrf.mxu0 }
 0x4db   :  { %2000 = vtanh.f32 %v812_v28  ;;  %v813_v57 = vmul.f32 0.5, %v811_v58 }
 0x4dc   :  { %v808_v13 = vpop.f32.mrf.mxu0 }
 0x4dd   :  { %2002 = vtanh.f32 %v813_v57 }
 0x4de   :  { %v1997_v14 = vpop.eup %1996 }
 0x4df   :  { %v752_v18 = vadd.f32 1.0, %v1997_v14 }
 0x4e0   :  { %v1999_v22 = vpop.eup %1998 }
 0x4e1   :  { %v753_v19 = vmul.f32 0.5, %v752_v18  ;;  %v754_v15 = vadd.f32 1.0, %v1999_v22 }
 0x4e3   :  { %v757_v29 = vmul.f32 %v1999_v22, %v753_v19  ;;  %v756_v45 = vmul.f32 %v753_v19, %v2490_v48  ;;  %v755_v24 = vmul.f32 0.5, %v754_v15 }
 0x4e5   :  { %759 = vrot.lane.b32.xlu1 %v757_v29, %s2215_s3 }
 0x4e8   :  { %v2001_v33 = vpop.eup %2000 }
 0x4e9   :  { %v816_v47 = vadd.f32 1.0, %v2001_v33 }
 0x4ea   :  { %v2003_v34 = vpop.eup %2002 }
 0x4eb   :  { %v817_v25 = vmul.f32 0.5, %v816_v47  ;;  %v818_v48 = vadd.f32 1.0, %v2003_v34 }
 0x4ed   :  { %v821_v62 = vmul.f32 %v2003_v34, %v817_v25  ;;  %v820_v7 = vmul.f32 %v817_v25, %v2487_v26  ;;  %v819_v57 = vmul.f32 0.5, %v818_v48  ;;  %v219_v48 = vadd.f32 %v2449_v36, %v2343_v31 }
 0x4ef   :  { %823 = vrot.lane.b32.xlu0 %v821_v62, %s2215_s3 }
 0x557   :  { %v760_v50 = vpop.permute.xlu1 %759 }
 0x558   :  { %v2534_v30 = vadd.f32 %v760_v50, %v756_v45 }
 0x55a   :  { %2004 = vtanh.f32 %v2534_v30 }
 0x561   :  { %v824_v32 = vpop.permute.xlu0 %823 }
 0x562   :  { %v2538_v12 = vadd.f32 %v824_v32, %v820_v7 }
 0x564   :  { %2006 = vtanh.f32 %v2538_v12 }
 0x567   :  { %v2005_v28 = vpop.eup %2004 }
 0x568   :  { %v764_v58 = vmul.f32 %v2005_v28, %v755_v24 }
 0x56a   :  { %v765_v46 = vpack.c.bf16 %v764_v58, %v764_v58  ;;  %v217_v58 = vadd.f32 %v2445_v35, %v2337_v27 }
 0x56c   :  { %878 = vrot.lane.b32.xlu1 %v765_v46, %s2215_s3 }
 0x571   :  { %v2007_v13 = vpop.eup %2006 }
 0x572   :  { %v828_v14 = vmul.f32 %v2007_v13, %v819_v57 }
 0x574   :  { %v829_v18 = vpack.c.bf16 %v828_v14, %v828_v14 }
 0x576   :  { %831 = vrot.lane.b32.xlu0 %v829_v18, %s2215_s3 }
 0x5de   :  { %v879_v26 = vpop.permute.xlu1 %878 }
 0x5df   :  { %1909 = vmatmul.mubr.msk.bf16.vlgmr.msra.gmra.mxu0 %vm335_vm3, %v879_v26 }
 0x5e0   :  { %1023 = vmatpush1.bf16.msra.mxu0 %v2355_v51  ;;  %1046 = vmatprep.mubr.bf16.mxu0 %v2213_v1 }
 0x5e1   :  { %1024 = vmatprep.subr.bf16.mxu0 %v2362_v54 }
 0x5e4   :  { %1025 = vmatpush1.bf16.msra.mxu0 %v2366_v55 }
 0x5e5   :  { %1026 = vmatprep.subr.bf16.mxu0 %v2372_v59 }
 0x5e8   :  { %v832_v19 = vpop.permute.xlu0 %831  ;;  %1027 = vmatpush1.bf16.msra.mxu0 %v2382_v63 }
 0x5e9   :  { %1908 = vmatmul.mubr.msk.bf16.vlgmr.msra.gmra.mxu1 %vm335_vm3, %v832_v19  ;;  %1028 = vmatprep.subr.bf16.mxu0 %v2385_v0 }
 0x5ea   :  { %956 = vmatpush1.bf16.msra.mxu1 %v2303_v5  ;;  %979 = vmatprep.mubr.bf16.mxu1 %v2213_v1 }
 0x5eb   :  { %957 = vmatprep.subr.bf16.mxu1 %v2306_v10 }
 0x5ec   :  { %1029 = vmatpush1.bf16.msra.mxu0 %v2395_v6 }
 0x5ed   :  { %1133 = vmatprep.subr.bf16.mxu0 %v2301_v4 }
 0x5ee   :  { %958 = vmatpush1.bf16.msra.mxu1 %v2309_v11 }
 0x5ef   :  { %959 = vmatprep.subr.bf16.mxu1 %v2312_v16 }
 0x5f2   :  { %960 = vmatpush1.bf16.msra.mxu1 %v2314_v17 }
 0x5f3   :  { %961 = vmatprep.subr.bf16.mxu1 %v2317_v20 }
 0x5f6   :  { %962 = vmatpush1.bf16.msra.mxu1 %v2320_v21 }
 0x5f7   :  { %1069 = vmatprep.subr.bf16.mxu1 %v2358_v52 }
 0x5f9   :  { %1910 = vmatmul.mubr.msk.bf16.vlgmr.msra.gmra.mxu1 %vm335_vm3, %v832_v19 }
 0x5fa   :  { %1070 = vmatpush1.bf16.msra.mxu1 %v2360_v53  ;;  %1093 = vmatprep.mubr.bf16.mxu1 %v2213_v1 }
 0x5fb   :  { %1071 = vmatprep.subr.bf16.mxu1 %v2368_v56 }
 0x5fe   :  { %1072 = vmatpush1.bf16.msra.mxu1 %v2376_v60 }
 0x5ff   :  { %1073 = vmatprep.subr.bf16.mxu1 %v2379_v61 }
 0x602   :  { %1074 = vmatpush1.bf16.msra.mxu1 %v2388_v2 }
 0x603   :  { %1075 = vmatprep.subr.bf16.mxu1 %v2391_v3 }
 0x606   :  { %1076 = vmatpush1.bf16.msra.mxu1 %v2400_v9 }
 0x607   :  { %1200 = vmatprep.subr.bf16.mxu1 %v2353_v49 }
 0x69f   :  { %v917_v22 = vpop.f32.mrf.mxu0 }
 0x6a1   :  { %v919_v29 = vpop.f32.mrf.mxu0 }
 0x6a3   :  { %v921_v33 = vpop.f32.mrf.mxu0 }
 0x6a5   :  { %v922_v47 = vpop.f32.mrf.mxu0 }
 0x6a9   :  { %v870_v25 = vpop.f32.mrf.mxu1 }
 0x6aa   :  { %v918_v34 = vadd.f32 %v917_v22, %v870_v25 }
 0x6ab   :  { %v872_v62 = vpop.f32.mrf.mxu1 }
 0x6ac   :  { %v924_v45 = vadd.f32 %v918_v34, %v2474_v8  ;;  %v920_v50 = vadd.f32 %v919_v29, %v872_v62 }
 0x6ad   :  { %v874_v7 = vpop.f32.mrf.mxu1 }
 0x6ae   :  { %v926_v32 = vmul.f32 0.5, %v924_v45  ;;  %v925_v15 = vadd.f32 %v920_v50, %v2481_v23 }
 0x6af   :  { %v875_v24 = vpop.f32.mrf.mxu1 }
 0x6b0   :  { %2008 = vtanh.f32 %v926_v32  ;;  %v927_v28 = vmul.f32 0.5, %v925_v15 }
 0x6b2   :  { %2010 = vtanh.f32 %v927_v28 }
 0x6b9   :  { %v981_v46 = vpop.f32.mrf.mxu1 }
 0x6ba   :  { %v988_v57 = vadd.f32 %v981_v46, %v217_v58 }
 0x6bb   :  { %v983_v13 = vpop.f32.mrf.mxu1 }
 0x6bc   :  { %v990_v14 = vmul.f32 0.5, %v988_v57  ;;  %v989_v18 = vadd.f32 %v983_v13, %v219_v48 }
 0x6bd   :  { %v2009_v26 = vpop.eup %2008  ;;  %v985_v19 = vpop.f32.mrf.mxu1 }
 0x6be   :  { %2012 = vtanh.f32 %v990_v14  ;;  %v991_v22 = vmul.f32 0.5, %v989_v18  ;;  %v930_v29 = vadd.f32 1.0, %v2009_v26 }
 0x6bf   :  { %v986_v33 = vpop.f32.mrf.mxu1  ;;  %v2011_v25 = vpop.eup %2010 }
 0x6c0   :  { %v931_v47 = vmul.f32 0.5, %v930_v29  ;;  %2014 = vtanh.f32 %v991_v22  ;;  %v932_v24 = vadd.f32 1.0, %v2011_v25 }
 0x6c2   :  { %v935_v34 = vmul.f32 %v2011_v25, %v931_v47  ;;  %v934_v7 = vmul.f32 %v931_v47, %v2534_v30  ;;  %v933_v48 = vmul.f32 0.5, %v932_v24 }
 0x6c4   :  { %937 = vrot.lane.b32.xlu1 %v935_v34, %s2215_s3 }
 0x6cb   :  { %v2013_v35 = vpop.eup %2012 }
 0x6cc   :  { %v994_v62 = vadd.f32 1.0, %v2013_v35 }
 0x6cd   :  { %v2015_v36 = vpop.eup %2014 }
 0x6ce   :  { %v995_v45 = vmul.f32 0.5, %v994_v62  ;;  %v996_v30 = vadd.f32 1.0, %v2015_v36 }
 0x6d0   :  { %v999_v50 = vmul.f32 %v2015_v36, %v995_v45  ;;  %v998_v28 = vmul.f32 %v995_v45, %v2538_v12  ;;  %v997_v18 = vmul.f32 0.5, %v996_v30  ;;  %v223_v45 = vadd.f32 %v2453_v37, %v2337_v27 }
 0x6d2   :  { %1001 = vrot.lane.b32.xlu0 %v999_v50, %s2215_s3  ;;  %v225_v50 = vadd.f32 %v2455_v38, %v2343_v31 }
 0x736   :  { %v938_v32 = vpop.permute.xlu1 %937 }
 0x737   :  { %v2582_v15 = vadd.f32 %v938_v32, %v934_v7 }
 0x739   :  { %2016 = vtanh.f32 %v2582_v15 }
 0x744   :  { %v1002_v58 = vpop.permute.xlu0 %1001 }
 0x745   :  { %v2586_v46 = vadd.f32 %v1002_v58, %v998_v28 }
 0x746   :  { %v2017_v57 = vpop.eup %2016 }
 0x747   :  { %2018 = vtanh.f32 %v2586_v46  ;;  %v942_v13 = vmul.f32 %v2017_v57, %v933_v48 }
 0x749   :  { %v943_v14 = vpack.c.bf16 %v942_v13, %v942_v13 }
 0x74b   :  { %1056 = vrot.lane.b32.xlu1 %v943_v14, %s2215_s3 }
 0x754   :  { %v2019_v26 = vpop.eup %2018 }
 0x755   :  { %v1006_v19 = vmul.f32 %v2019_v26, %v997_v18 }
 0x757   :  { %v1007_v22 = vpack.c.bf16 %v1006_v19, %v1006_v19 }
 0x759   :  { %1009 = vrot.lane.b32.xlu0 %v1007_v22, %s2215_s3 }
 0x7bd   :  { %v1057_v29 = vpop.permute.xlu1 %1056 }
 0x7be   :  { %1912 = vmatmul.mubr.msk.bf16.vlgmr.msra.gmra.mxu1 %vm335_vm3, %v1057_v29 }
 0x7bf   :  { %1201 = vmatpush1.bf16.msra.mxu1 %v2355_v51  ;;  %1224 = vmatprep.mubr.bf16.mxu1 %v2213_v1 }
 0x7c0   :  { %1202 = vmatprep.subr.bf16.mxu1 %v2362_v54 }
 0x7c3   :  { %1203 = vmatpush1.bf16.msra.mxu1 %v2366_v55 }
 0x7c4   :  { %1204 = vmatprep.subr.bf16.mxu1 %v2372_v59 }
 0x7c7   :  { %1205 = vmatpush1.bf16.msra.mxu1 %v2382_v63 }
 0x7c8   :  { %1206 = vmatprep.subr.bf16.mxu1 %v2385_v0 }
 0x7cb   :  { %v1010_v12 = vpop.permute.xlu0 %1009  ;;  %1207 = vmatpush1.bf16.msra.mxu1 %v2395_v6 }
 0x7cc   :  { %1911 = vmatmul.mubr.msk.bf16.vlgmr.msra.gmra.mxu0 %vm335_vm3, %v1010_v12  ;;  %1311 = vmatprep.subr.bf16.mxu1 %v2301_v4 }
 0x7cd   :  { %1134 = vmatpush1.bf16.msra.mxu0 %v2303_v5  ;;  %1157 = vmatprep.mubr.bf16.mxu0 %v2213_v1 }
 0x7ce   :  { %1135 = vmatprep.subr.bf16.mxu0 %v2306_v10 }
 0x7d1   :  { %1136 = vmatpush1.bf16.msra.mxu0 %v2309_v11 }
 0x7d2   :  { %1137 = vmatprep.subr.bf16.mxu0 %v2312_v16 }
 0x7d5   :  { %1138 = vmatpush1.bf16.msra.mxu0 %v2314_v17 }
 0x7d6   :  { %1139 = vmatprep.subr.bf16.mxu0 %v2317_v20 }
 0x7d9   :  { %1140 = vmatpush1.bf16.msra.mxu0 %v2320_v21 }
 0x7da   :  { %1247 = vmatprep.subr.bf16.mxu0 %v2358_v52 }
 0x7dc   :  { %1913 = vmatmul.mubr.msk.bf16.vlgmr.msra.gmra.mxu0 %vm335_vm3, %v1010_v12 }
 0x7dd   :  { %1248 = vmatpush1.bf16.msra.mxu0 %v2360_v53  ;;  %1271 = vmatprep.mubr.bf16.mxu0 %v2213_v1 }
 0x7de   :  { %1249 = vmatprep.subr.bf16.mxu0 %v2368_v56 }
 0x7e1   :  { %1250 = vmatpush1.bf16.msra.mxu0 %v2376_v60 }
 0x7e2   :  { %1251 = vmatprep.subr.bf16.mxu0 %v2379_v61 }
 0x7e5   :  { %1252 = vmatpush1.bf16.msra.mxu0 %v2388_v2 }
 0x7e6   :  { %1253 = vmatprep.subr.bf16.mxu0 %v2391_v3 }
 0x7e9   :  { %1254 = vmatpush1.bf16.msra.mxu0 %v2400_v9 }
 0x7ea   :  { %1378 = vmatprep.subr.bf16.mxu0 %v2353_v49 }
 0x87e   :  { %v1095_v4 = vpop.f32.mrf.mxu1 }
 0x880   :  { %v1097_v5 = vpop.f32.mrf.mxu1 }
 0x882   :  { %v1099_v10 = vpop.f32.mrf.mxu1 }
 0x884   :  { %v1100_v11 = vpop.f32.mrf.mxu1 }
 0x88c   :  { %v1048_v16 = vpop.f32.mrf.mxu0 }
 0x88d   :  { %v1096_v17 = vadd.f32 %v1095_v4, %v1048_v16 }
 0x88e   :  { %v1050_v20 = vpop.f32.mrf.mxu0 }
 0x88f   :  { %v1102_v21 = vadd.f32 %v1096_v17, %v2474_v8  ;;  %v1098_v33 = vadd.f32 %v1097_v5, %v1050_v20 }
 0x890   :  { %v1052_v47 = vpop.f32.mrf.mxu0 }
 0x891   :  { %v1104_v25 = vmul.f32 0.5, %v1102_v21  ;;  %v1103_v34 = vadd.f32 %v1098_v33, %v2481_v23 }
 0x892   :  { %v1053_v35 = vpop.f32.mrf.mxu0 }
 0x893   :  { %2020 = vtanh.f32 %v1104_v25  ;;  %v1105_v62 = vmul.f32 0.5, %v1103_v34 }
 0x895   :  { %2022 = vtanh.f32 %v1105_v62 }
 0x89c   :  { %v1159_v36 = vpop.f32.mrf.mxu0 }
 0x89d   :  { %v1166_v7 = vadd.f32 %v1159_v36, %v223_v45  ;;  %v2649_v36 = vld [vmem:[#allocation8 + $0x34] ss:$8 sps:$4 sm:$0xff]  }
 0x89e   :  { %v1161_v32 = vpop.f32.mrf.mxu0 }
 0x89f   :  { %v1168_v24 = vmul.f32 0.5, %v1166_v7  ;;  %v1167_v28 = vadd.f32 %v1161_v32, %v225_v50 }
 0x8a0   :  { %v2021_v58 = vpop.eup %2020  ;;  %v1163_v48 = vpop.f32.mrf.mxu0 }
 0x8a1   :  { %2024 = vtanh.f32 %v1168_v24  ;;  %v1169_v57 = vmul.f32 0.5, %v1167_v28  ;;  %v1108_v13 = vadd.f32 1.0, %v2021_v58 }
 0x8a2   :  { %v1164_v14 = vpop.f32.mrf.mxu0  ;;  %v2023_v18 = vpop.eup %2022 }
 0x8a3   :  { %v1109_v30 = vmul.f32 0.5, %v1108_v13  ;;  %2026 = vtanh.f32 %v1169_v57  ;;  %v1110_v10 = vadd.f32 1.0, %v2023_v18  ;;  %v229_v57 = vadd.f32 %v2459_v40, %v2343_v31 }
 0x8a5   :  { %v1113_v26 = vmul.f32 %v2023_v18, %v1109_v30  ;;  %v1112_v12 = vmul.f32 %v1109_v30, %v2582_v15  ;;  %v1111_v20 = vmul.f32 0.5, %v1110_v10 }
 0x8a7   :  { %1115 = vrot.lane.b32.xlu1 %v1113_v26, %s2215_s3 }
 0x8ae   :  { %v2025_v37 = vpop.eup %2024 }
 0x8af   :  { %v1172_v19 = vadd.f32 1.0, %v2025_v37 }
 0x8b0   :  { %v2027_v38 = vpop.eup %2026 }
 0x8b1   :  { %v1173_v22 = vmul.f32 0.5, %v1172_v19  ;;  %v1174_v15 = vadd.f32 1.0, %v2027_v38 }
 0x8b3   :  { %v1177_v29 = vmul.f32 %v2027_v38, %v1173_v22  ;;  %v1176_v11 = vmul.f32 %v1173_v22, %v2586_v46  ;;  %v1175_v25 = vmul.f32 0.5, %v1174_v15 }
 0x8b5   :  { %1179 = vrot.lane.b32.xlu0 %v1177_v29, %s2215_s3 }
 0x919   :  { %v1116_v4 = vpop.permute.xlu1 %1115 }
 0x91a   :  { %v2630_v5 = vadd.f32 %v1116_v4, %v1112_v12 }
 0x91c   :  { %2028 = vtanh.f32 %v2630_v5 }
 0x927   :  { %v1180_v16 = vpop.permute.xlu0 %1179 }
 0x928   :  { %v2634_v17 = vadd.f32 %v1180_v16, %v1176_v11 }
 0x929   :  { %v2029_v21 = vpop.eup %2028 }
 0x92a   :  { %2030 = vtanh.f32 %v2634_v17  ;;  %v1120_v33 = vmul.f32 %v2029_v21, %v1111_v20 }
 0x92c   :  { %v1121_v47 = vpack.c.bf16 %v1120_v33, %v1120_v33 }
 0x92e   :  { %1234 = vrot.lane.b32.xlu1 %v1121_v47, %s2215_s3 }
 0x937   :  { %v2031_v34 = vpop.eup %2030 }
 0x938   :  { %v1184_v35 = vmul.f32 %v2031_v34, %v1175_v25 }
 0x93a   :  { %v1185_v62 = vpack.c.bf16 %v1184_v35, %v1184_v35 }
 0x93c   :  { %1187 = vrot.lane.b32.xlu0 %v1185_v62, %s2215_s3 }
 0x9a0   :  { %v1235_v45 = vpop.permute.xlu1 %1234 }
 0x9a1   :  { %1915 = vmatmul.mubr.msk.bf16.vlgmr.msra.gmra.mxu0 %vm335_vm3, %v1235_v45 }
 0x9a2   :  { %1379 = vmatpush1.bf16.msra.mxu0 %v2355_v51  ;;  %1402 = vmatprep.mubr.bf16.mxu0 %v2213_v1  ;;  %v2652_v51 = vld [vmem:[#allocation8 + $0x30] ss:$8 sps:$4 sm:$0xff]  }
 0x9a3   :  { %1380 = vmatprep.subr.bf16.mxu0 %v2362_v54  ;;  %v2656_v54 = vld [vmem:[#allocation8 + $0x24] ss:$8 sps:$4 sm:$0xff]  }
 0x9a6   :  { %1381 = vmatpush1.bf16.msra.mxu0 %v2366_v55  ;;  %v2659_v55 = vld [vmem:[#allocation8 + $0x20] ss:$8 sps:$4 sm:$0xff]  }
 0x9a7   :  { %1382 = vmatprep.subr.bf16.mxu0 %v2372_v59  ;;  %v2662_v59 = vld [vmem:[#allocation8 + $0x14] ss:$8 sps:$4 sm:$0xff]  }
 0x9aa   :  { %1383 = vmatpush1.bf16.msra.mxu0 %v2382_v63  ;;  %v2665_v63 = vld [vmem:[#allocation8 + $0x10] ss:$8 sps:$4 sm:$0xff]  }
 0x9ab   :  { %1384 = vmatprep.subr.bf16.mxu0 %v2385_v0  ;;  %v2668_v0 = vld [vmem:[#allocation8 + $0x4] ss:$8 sps:$4 sm:$0xff]  }
 0x9ae   :  { %v1188_v46 = vpop.permute.xlu0 %1187  ;;  %1385 = vmatpush1.bf16.msra.mxu0 %v2395_v6  ;;  %v2671_v6 = vld [vmem:[#allocation8] ss:$8 sps:$4 sm:$0xff]  }
 0x9af   :  { %1914 = vmatmul.mubr.msk.bf16.vlgmr.msra.gmra.mxu1 %vm335_vm3, %v1188_v46  ;;  %1489 = vmatprep.subr.bf16.mxu0 %v2649_v36 }
 0x9b0   :  { %1312 = vmatpush1.bf16.msra.mxu1 %v2652_v51  ;;  %1335 = vmatprep.mubr.bf16.mxu1 %v2213_v1 }
 0x9b1   :  { %1313 = vmatprep.subr.bf16.mxu1 %v2656_v54 }
 0x9b4   :  { %1314 = vmatpush1.bf16.msra.mxu1 %v2659_v55 }
 0x9b5   :  { %1315 = vmatprep.subr.bf16.mxu1 %v2662_v59 }
 0x9b8   :  { %1316 = vmatpush1.bf16.msra.mxu1 %v2665_v63 }
 0x9b9   :  { %1317 = vmatprep.subr.bf16.mxu1 %v2668_v0 }
 0x9bc   :  { %1318 = vmatpush1.bf16.msra.mxu1 %v2671_v6 }
 0x9bd   :  { %1425 = vmatprep.subr.bf16.mxu1 %v2358_v52 }
 0x9bf   :  { %1916 = vmatmul.mubr.msk.bf16.vlgmr.msra.gmra.mxu1 %vm335_vm3, %v1188_v46 }
 0x9c0   :  { %1426 = vmatpush1.bf16.msra.mxu1 %v2360_v53  ;;  %1449 = vmatprep.mubr.bf16.mxu1 %v2213_v1 }
 0x9c1   :  { %1427 = vmatprep.subr.bf16.mxu1 %v2368_v56 }
 0x9c4   :  { %1428 = vmatpush1.bf16.msra.mxu1 %v2376_v60 }
 0x9c5   :  { %1429 = vmatprep.subr.bf16.mxu1 %v2379_v61 }
 0x9c8   :  { %1430 = vmatpush1.bf16.msra.mxu1 %v2388_v2 }
 0x9c9   :  { %1431 = vmatprep.subr.bf16.mxu1 %v2391_v3 }
 0x9cc   :  { %1432 = vmatpush1.bf16.msra.mxu1 %v2400_v9 }
 0x9cd   :  { %1556 = vmatprep.subr.bf16.mxu1 %v2353_v49  ;;  %v227_v49 = vadd.f32 %v2457_v39, %v2337_v27 }
 0xa61   :  { %v1273_v52 = vpop.f32.mrf.mxu0 }
 0xa63   :  { %v1275_v50 = vpop.f32.mrf.mxu0 }
 0xa65   :  { %v1277_v7 = vpop.f32.mrf.mxu0 }
 0xa67   :  { %v1278_v53 = vpop.f32.mrf.mxu0 }
 0xa6f   :  { %v1226_v32 = vpop.f32.mrf.mxu1 }
 0xa70   :  { %v1274_v24 = vadd.f32 %v1273_v52, %v1226_v32 }
 0xa71   :  { %v1228_v28 = vpop.f32.mrf.mxu1 }
 0xa72   :  { %v1280_v56 = vadd.f32 %v1274_v24, %v2474_v8  ;;  %v1276_v60 = vadd.f32 %v1275_v50, %v1228_v28  ;;  %v2708_v24 = vld [vmem:[#allocation9 + $0x24] ss:$8 sps:$4 sm:$0xff]   ;;  %v2711_v28 = vld [vmem:[#allocation9 + $0x20] ss:$8 sps:$4 sm:$0xff]  }
 0xa73   :  { %v1230_v58 = vpop.f32.mrf.mxu1 }
 0xa74   :  { %v1282_v61 = vmul.f32 0.5, %v1280_v56  ;;  %v1281_v2 = vadd.f32 %v1276_v60, %v2481_v23  ;;  %v2714_v56 = vld [vmem:[#allocation9 + $0x14] ss:$8 sps:$4 sm:$0xff]   ;;  %v2717_v60 = vld [vmem:[#allocation9 + $0x10] ss:$8 sps:$4 sm:$0xff]  }
 0xa75   :  { %v1231_v48 = vpop.f32.mrf.mxu1  ;;  %v2720_v58 = vld [vmem:[#allocation9 + $0x4] ss:$8 sps:$4 sm:$0xff]  }
 0xa76   :  { %2032 = vtanh.f32 %v1282_v61  ;;  %v1283_v3 = vmul.f32 0.5, %v1281_v2  ;;  %v2723_v2 = vld [vmem:[#allocation9] ss:$8 sps:$4 sm:$0xff]   ;;  %v2736_v48 = vld [vmem:[#allocation11 + $0x34] ss:$8 sps:$4 sm:$0xff]  }
 0xa78   :  { %2034 = vtanh.f32 %v1283_v3  ;;  %v2744_v3 = vld [vmem:[#allocation11 + $0x24] ss:$8 sps:$4 sm:$0xff]  }
 0xa7f   :  { %v1337_v9 = vpop.f32.mrf.mxu1 }
 0xa80   :  { %v1344_v13 = vadd.f32 %v1337_v9, %v227_v49  ;;  %v2747_v49 = vld [vmem:[#allocation11 + $0x20] ss:$8 sps:$4 sm:$0xff]   ;;  %v2750_v9 = vld [vmem:[#allocation11 + $0x14] ss:$8 sps:$4 sm:$0xff]  }
 0xa81   :  { %v1339_v14 = vpop.f32.mrf.mxu1 }
 0xa82   :  { %v1346_v30 = vmul.f32 0.5, %v1344_v13  ;;  %v1345_v18 = vadd.f32 %v1339_v14, %v229_v57  ;;  %v2753_v57 = vld [vmem:[#allocation11 + $0x10] ss:$8 sps:$4 sm:$0xff]   ;;  %v2756_v13 = vld [vmem:[#allocation11 + $0x4] ss:$8 sps:$4 sm:$0xff]  }
 0xa83   :  { %v2033_v26 = vpop.eup %2032  ;;  %v1341_v37 = vpop.f32.mrf.mxu1  ;;  %v2759_v14 = vld [vmem:[#allocation11] ss:$8 sps:$4 sm:$0xff]  }
 0xa84   :  { %2036 = vtanh.f32 %v1346_v30  ;;  %v1347_v19 = vmul.f32 0.5, %v1345_v18  ;;  %v1286_v22 = vadd.f32 1.0, %v2033_v26  ;;  %v2099_v30 = vld [vmem:[#allocation9 + $0x34] ss:$8 sps:$4 sm:$0xff]  }
 0xa85   :  { %v1342_v38 = vpop.f32.mrf.mxu1  ;;  %v2035_v12 = vpop.eup %2034 }
 0xa86   :  { %v1287_v29 = vmul.f32 0.5, %v1286_v22  ;;  %2038 = vtanh.f32 %v1347_v19  ;;  %v1288_v47 = vadd.f32 1.0, %v2035_v12 }
 0xa88   :  { %v1291_v4 = vmul.f32 %v2035_v12, %v1287_v29  ;;  %v1290_v20 = vmul.f32 %v1287_v29, %v2630_v5  ;;  %v1289_v35 = vmul.f32 0.5, %v1288_v47  ;;  %v235_v47 = vadd.f32 %v2463_v42, %v2343_v31 }
 0xa8a   :  { %1293 = vrot.lane.b32.xlu1 %v1291_v4, %s2215_s3 }
 0xa91   :  { %v2037_v39 = vpop.eup %2036 }
 0xa92   :  { %v1350_v10 = vadd.f32 1.0, %v2037_v39 }
 0xa93   :  { %v2039_v40 = vpop.eup %2038 }
 0xa94   :  { %v1351_v11 = vmul.f32 0.5, %v1350_v10  ;;  %v1352_v5 = vadd.f32 1.0, %v2039_v40 }
 0xa96   :  { %v1355_v16 = vmul.f32 %v2039_v40, %v1351_v11  ;;  %v1354_v15 = vmul.f32 %v1351_v11, %v2634_v17  ;;  %v1353_v52 = vmul.f32 0.5, %v1352_v5  ;;  %v2704_v17 = vld [vmem:[#allocation9 + $0x30] ss:$8 sps:$4 sm:$0xff]  }
 0xa98   :  { %1357 = vrot.lane.b32.xlu0 %v1355_v16, %s2215_s3 }
 0xafc   :  { %v1294_v21 = vpop.permute.xlu1 %1293 }
 0xafd   :  { %v2694_v33 = vadd.f32 %v1294_v21, %v1290_v20  ;;  %v233_v20 = vadd.f32 %v2461_v41, %v2337_v27 }
 0xaff   :  { %2040 = vtanh.f32 %v2694_v33 }
 0xb0a   :  { %v1358_v25 = vpop.permute.xlu0 %1357 }
 0xb0b   :  { %v2698_v34 = vadd.f32 %v1358_v25, %v1354_v15 }
 0xb0c   :  { %v2041_v62 = vpop.eup %2040 }
 0xb0d   :  { %2042 = vtanh.f32 %v2698_v34  ;;  %v1298_v45 = vmul.f32 %v2041_v62, %v1289_v35 }
 0xb0f   :  { %v1299_v46 = vpack.c.bf16 %v1298_v45, %v1298_v45 }
 0xb11   :  { %1412 = vrot.lane.b32.xlu1 %v1299_v46, %s2215_s3 }
 0xb1a   :  { %v2043_v50 = vpop.eup %2042 }
 0xb1b   :  { %v1362_v7 = vmul.f32 %v2043_v50, %v1353_v52 }
 0xb1d   :  { %v1363_v53 = vpack.c.bf16 %v1362_v7, %v1362_v7 }
 0xb1f   :  { %1365 = vrot.lane.b32.xlu0 %v1363_v53, %s2215_s3 }
 0xb83   :  { %v1413_v32 = vpop.permute.xlu1 %1412 }
 0xb84   :  { %1918 = vmatmul.mubr.msk.bf16.vlgmr.msra.gmra.mxu1 %vm335_vm3, %v1413_v32 }
 0xb85   :  { %1557 = vmatpush1.bf16.msra.mxu1 %v2704_v17  ;;  %1580 = vmatprep.mubr.bf16.mxu1 %v2213_v1 }
 0xb86   :  { %1558 = vmatprep.subr.bf16.mxu1 %v2708_v24 }
 0xb89   :  { %1559 = vmatpush1.bf16.msra.mxu1 %v2711_v28 }
 0xb8a   :  { %1560 = vmatprep.subr.bf16.mxu1 %v2714_v56 }
 0xb8d   :  { %1561 = vmatpush1.bf16.msra.mxu1 %v2717_v60 }
 0xb8e   :  { %1562 = vmatprep.subr.bf16.mxu1 %v2720_v58 }
 0xb91   :  { %v1366_v61 = vpop.permute.xlu0 %1365  ;;  %1563 = vmatpush1.bf16.msra.mxu1 %v2723_v2 }
 0xb92   :  { %1917 = vmatmul.mubr.msk.bf16.vlgmr.msra.gmra.mxu0 %vm335_vm3, %v1366_v61  ;;  %1667 = vmatprep.subr.bf16.mxu1 %v2649_v36  ;;  %v2740_v36 = vld [vmem:[#allocation11 + $0x30] ss:$8 sps:$4 sm:$0xff]  }
 0xb93   :  { %1490 = vmatpush1.bf16.msra.mxu0 %v2652_v51  ;;  %1513 = vmatprep.mubr.bf16.mxu0 %v2213_v1 }
 0xb94   :  { %1491 = vmatprep.subr.bf16.mxu0 %v2656_v54 }
 0xb97   :  { %1492 = vmatpush1.bf16.msra.mxu0 %v2659_v55 }
 0xb98   :  { %1493 = vmatprep.subr.bf16.mxu0 %v2662_v59 }
 0xb9b   :  { %1494 = vmatpush1.bf16.msra.mxu0 %v2665_v63 }
 0xb9c   :  { %1495 = vmatprep.subr.bf16.mxu0 %v2668_v0 }
 0xb9f   :  { %1496 = vmatpush1.bf16.msra.mxu0 %v2671_v6 }
 0xba0   :  { %1603 = vmatprep.subr.bf16.mxu0 %v2736_v48 }
 0xba2   :  { %1919 = vmatmul.mubr.msk.bf16.vlgmr.msra.gmra.mxu0 %vm335_vm3, %v1366_v61 }
 0xba3   :  { %1604 = vmatpush1.bf16.msra.mxu0 %v2740_v36  ;;  %1627 = vmatprep.mubr.bf16.mxu0 %v2213_v1 }
 0xba4   :  { %1605 = vmatprep.subr.bf16.mxu0 %v2744_v3 }
 0xba7   :  { %1606 = vmatpush1.bf16.msra.mxu0 %v2747_v49 }
 0xba8   :  { %1607 = vmatprep.subr.bf16.mxu0 %v2750_v9 }
 0xbab   :  { %1608 = vmatpush1.bf16.msra.mxu0 %v2753_v57 }
 0xbac   :  { %1609 = vmatprep.subr.bf16.mxu0 %v2756_v13 }
 0xbaf   :  { %1610 = vmatpush1.bf16.msra.mxu0 %v2759_v14 }
 0xbb0   :  { %1734 = vmatprep.subr.bf16.mxu0 %v2099_v30 }
 0xc44   :  { %v1451_v18 = vpop.f32.mrf.mxu1 }
 0xc46   :  { %v1453_v26 = vpop.f32.mrf.mxu1 }
 0xc48   :  { %v1455_v37 = vpop.f32.mrf.mxu1 }
 0xc4a   :  { %v1456_v19 = vpop.f32.mrf.mxu1 }
 0xc52   :  { %v1404_v22 = vpop.f32.mrf.mxu0 }
 0xc53   :  { %v1452_v38 = vadd.f32 %v1451_v18, %v1404_v22 }
 0xc54   :  { %v1406_v29 = vpop.f32.mrf.mxu0 }
 0xc55   :  { %v1458_v12 = vadd.f32 %v1452_v38, %v2474_v8  ;;  %v1454_v4 = vadd.f32 %v1453_v26, %v1406_v29 }
 0xc56   :  { %v1408_v39 = vpop.f32.mrf.mxu0 }
 0xc57   :  { %v1460_v10 = vmul.f32 0.5, %v1458_v12  ;;  %v1459_v11 = vadd.f32 %v1454_v4, %v2481_v23 }
 0xc58   :  { %v1409_v40 = vpop.f32.mrf.mxu0 }
 0xc59   :  { %2044 = vtanh.f32 %v1460_v10  ;;  %v1461_v16 = vmul.f32 0.5, %v1459_v11 }
 0xc5b   :  { %2046 = vtanh.f32 %v1461_v16 }
 0xc62   :  { %v1515_v21 = vpop.f32.mrf.mxu0 }
 0xc63   :  { %v1522_v15 = vadd.f32 %v1515_v21, %v233_v20 }
 0xc64   :  { %v1517_v25 = vpop.f32.mrf.mxu0 }
 0xc65   :  { %v1524_v35 = vmul.f32 0.5, %v1522_v15  ;;  %v1523_v62 = vadd.f32 %v1517_v25, %v235_v47 }
 0xc66   :  { %v2045_v45 = vpop.eup %2044  ;;  %v1519_v46 = vpop.f32.mrf.mxu0 }
 0xc67   :  { %2048 = vtanh.f32 %v1524_v35  ;;  %v1525_v5 = vmul.f32 0.5, %v1523_v62  ;;  %v1464_v52 = vadd.f32 1.0, %v2045_v45 }
 0xc68   :  { %v1520_v50 = vpop.f32.mrf.mxu0  ;;  %v2047_v53 = vpop.eup %2046 }
 0xc69   :  { %v1465_v7 = vmul.f32 0.5, %v1464_v52  ;;  %2050 = vtanh.f32 %v1525_v5  ;;  %v1466_v22 = vadd.f32 1.0, %v2047_v53 }
 0xc6b   :  { %v1469_v32 = vmul.f32 %v2047_v53, %v1465_v7  ;;  %v1468_v26 = vmul.f32 %v1465_v7, %v2694_v33  ;;  %v1467_v4 = vmul.f32 0.5, %v1466_v22 }
 0xc6d   :  { %1471 = vrot.lane.b32.xlu1 %v1469_v32, %s2215_s3 }
 0xc74   :  { %v2049_v41 = vpop.eup %2048 }
 0xc75   :  { %v1528_v61 = vadd.f32 1.0, %v2049_v41 }
 0xc76   :  { %v2051_v42 = vpop.eup %2050 }
 0xc77   :  { %v1529_v30 = vmul.f32 0.5, %v1528_v61  ;;  %v1530_v33 = vadd.f32 1.0, %v2051_v42 }
 0xc79   :  { %v1533_v18 = vmul.f32 %v2051_v42, %v1529_v30  ;;  %v1532_v38 = vmul.f32 %v1529_v30, %v2698_v34  ;;  %v1531_v40 = vmul.f32 0.5, %v1530_v33 }
 0xc7b   :  { %1535 = vrot.lane.b32.xlu0 %v1533_v18, %s2215_s3 }
 0xcdf   :  { %v1472_v37 = vpop.permute.xlu1 %1471 }
 0xce0   :  { %v2771_v19 = vadd.f32 %v1472_v37, %v1468_v26 }
 0xce2   :  { %2052 = vtanh.f32 %v2771_v19 }
 0xced   :  { %v1536_v29 = vpop.permute.xlu0 %1535 }
 0xcee   :  { %v2775_v12 = vadd.f32 %v1536_v29, %v1532_v38 }
 0xcef   :  { %v2053_v39 = vpop.eup %2052 }
 0xcf0   :  { %2054 = vtanh.f32 %v2775_v12  ;;  %v1476_v10 = vmul.f32 %v2053_v39, %v1467_v4  ;;  %v1925_v39 = vld [vmem:[%s2841_s7] ss:$0 sm:$0xff] }
 0xcf2   :  { %v1477_v11 = vpack.c.bf16 %v1476_v10, %v1476_v10 }
 0xcf4   :  { %1590 = vrot.lane.b32.xlu1 %v1477_v11, %s2215_s3 }
 0xcfd   :  { %v2055_v16 = vpop.eup %2054 }
 0xcfe   :  { %v1540_v20 = vmul.f32 %v2055_v16, %v1531_v40 }
 0xd00   :  { %v1541_v21 = vpack.c.bf16 %v1540_v20, %v1540_v20 }
 0xd02   :  { %1543 = vrot.lane.b32.xlu0 %v1541_v21, %s2215_s3 }
 0xd66   :  { %v1591_v47 = vpop.permute.xlu1 %1590 }
 0xd67   :  { %1921 = vmatmul.mubr.msk.bf16.vlgmr.msra.gmra.mxu0 %vm335_vm3, %v1591_v47 }
 0xd68   :  { %1735 = vmatpush1.bf16.msra.mxu0 %v2704_v17  ;;  %1758 = vmatprep.mubr.bf16.mxu0 %v2213_v1 }
 0xd69   :  { %1736 = vmatprep.subr.bf16.mxu0 %v2708_v24 }
 0xd6c   :  { %1737 = vmatpush1.bf16.msra.mxu0 %v2711_v28 }
 0xd6d   :  { %1738 = vmatprep.subr.bf16.mxu0 %v2714_v56 }
 0xd70   :  { %1739 = vmatpush1.bf16.msra.mxu0 %v2717_v60 }
 0xd71   :  { %1740 = vmatprep.subr.bf16.mxu0 %v2720_v58 }
 0xd74   :  { %v1544_v34 = vpop.permute.xlu0 %1543  ;;  %1741 = vmatpush1.bf16.msra.mxu0 %v2723_v2  ;;  %v237_v2 = vadd.f32 %v2465_v43, %v2337_v27 }
 0xd75   :  { %1920 = vmatmul.mubr.msk.bf16.vlgmr.msra.gmra.mxu1 %vm335_vm3, %v1544_v34 }
 0xd76   :  { %1668 = vmatpush1.bf16.msra.mxu1 %v2652_v51  ;;  %1691 = vmatprep.mubr.bf16.mxu1 %v2213_v1 }
 0xd77   :  { %1669 = vmatprep.subr.bf16.mxu1 %v2656_v54 }
 0xd7a   :  { %1670 = vmatpush1.bf16.msra.mxu1 %v2659_v55 }
 0xd7b   :  { %1671 = vmatprep.subr.bf16.mxu1 %v2662_v59 }
 0xd7e   :  { %1672 = vmatpush1.bf16.msra.mxu1 %v2665_v63 }
 0xd7f   :  { %1673 = vmatprep.subr.bf16.mxu1 %v2668_v0 }
 0xd82   :  { %1674 = vmatpush1.bf16.msra.mxu1 %v2671_v6 }
 0xd83   :  { %1781 = vmatprep.subr.bf16.mxu1 %v2736_v48 }
 0xd85   :  { %1922 = vmatmul.mubr.msk.bf16.vlgmr.msra.gmra.mxu1 %vm335_vm3, %v1544_v34 }
 0xd86   :  { %1782 = vmatpush1.bf16.msra.mxu1 %v2740_v36  ;;  %1805 = vmatprep.mubr.bf16.mxu1 %v2213_v1  ;;  %v239_v36 = vadd.f32 %v2467_v44, %v2343_v31 }
 0xd87   :  { %1783 = vmatprep.subr.bf16.mxu1 %v2744_v3 }
 0xd8a   :  { %1784 = vmatpush1.bf16.msra.mxu1 %v2747_v49 }
 0xd8b   :  { %1785 = vmatprep.subr.bf16.mxu1 %v2750_v9 }
 0xd8e   :  { %1786 = vmatpush1.bf16.msra.mxu1 %v2753_v57 }
 0xd8f   :  { %1787 = vmatprep.subr.bf16.mxu1 %v2756_v13 }
 0xd92   :  { %1788 = vmatpush1.bf16.msra.mxu1 %v2759_v14 }
 0xe27   :  { %v1629_v51 = vpop.f32.mrf.mxu0 }
 0xe29   :  { %v1631_v54 = vpop.f32.mrf.mxu0 }
 0xe2b   :  { %v1633_v55 = vpop.f32.mrf.mxu0 }
 0xe2d   :  { %v1634_v59 = vpop.f32.mrf.mxu0 }
 0xe35   :  { %v1582_v63 = vpop.f32.mrf.mxu1 }
 0xe36   :  { %v1630_v0 = vadd.f32 %v1629_v51, %v1582_v63 }
 0xe37   :  { %v1584_v6 = vpop.f32.mrf.mxu1 }
 0xe38   :  { %v1636_v1 = vadd.f32 %v1630_v0, %v2474_v8  ;;  %v1632_v17 = vadd.f32 %v1631_v54, %v1584_v6 }
 0xe39   :  { %v1586_v24 = vpop.f32.mrf.mxu1 }
 0xe3a   :  { %v1638_v28 = vmul.f32 0.5, %v1636_v1  ;;  %v1637_v56 = vadd.f32 %v1632_v17, %v2481_v23 }
 0xe3b   :  { %v1587_v60 = vpop.f32.mrf.mxu1 }
 0xe3c   :  { %2056 = vtanh.f32 %v1638_v28  ;;  %v1639_v58 = vmul.f32 0.5, %v1637_v56 }
 0xe3e   :  { %2058 = vtanh.f32 %v1639_v58 }
 0xe45   :  { %v1693_v48 = vpop.f32.mrf.mxu1 }
 0xe46   :  { %v1700_v3 = vadd.f32 %v1693_v48, %v237_v2 }
 0xe47   :  { %v1695_v49 = vpop.f32.mrf.mxu1 }
 0xe48   :  { %v1702_v9 = vmul.f32 0.5, %v1700_v3  ;;  %v1701_v57 = vadd.f32 %v1695_v49, %v239_v36 }
 0xe49   :  { %v2057_v13 = vpop.eup %2056  ;;  %v1697_v14 = vpop.f32.mrf.mxu1 }
 0xe4a   :  { %2060 = vtanh.f32 %v1702_v9  ;;  %v1703_v15 = vmul.f32 0.5, %v1701_v57  ;;  %v1642_v25 = vadd.f32 1.0, %v2057_v13  ;;  %v1926_v9 = vld [vmem:[#allocation3] ss:$0 sm:$0xff] }
 0xe4b   :  { %v1698_v35 = vpop.f32.mrf.mxu1  ;;  %v2059_v45 = vpop.eup %2058 }
 0xe4c   :  { %v1643_v62 = vmul.f32 0.5, %v1642_v25  ;;  %2062 = vtanh.f32 %v1703_v15  ;;  %v1644_v53 = vadd.f32 1.0, %v2059_v45 }
 0xe4e   :  { %v1647_v46 = vmul.f32 %v2059_v45, %v1643_v62  ;;  %v1646_v52 = vmul.f32 %v1643_v62, %v2771_v19  ;;  %v1645_v30 = vmul.f32 0.5, %v1644_v53 }
 0xe50   :  { %1649 = vrot.lane.b32.xlu0 %v1647_v46, %s2215_s3 }
 0xe57   :  { %v2061_v27 = vpop.eup %2060 }
 0xe58   :  { %v1706_v43 = vadd.f32 1.0, %v2061_v27 }
 0xe59   :  { %v2063_v31 = vpop.eup %2062 }
 0xe5a   :  { %v1707_v5 = vmul.f32 0.5, %v1706_v43  ;;  %v1708_v37 = vadd.f32 1.0, %v2063_v31 }
 0xe5c   :  { %v1711_v44 = vmul.f32 %v2063_v31, %v1707_v5  ;;  %v1710_v32 = vmul.f32 %v1707_v5, %v2775_v12  ;;  %v1709_v22 = vmul.f32 0.5, %v1708_v37 }
 0xe5e   :  { %1713 = vrot.lane.b32.xlu1 %v1711_v44, %s2215_s3 }
 0xec2   :  { %v1650_v50 = vpop.permute.xlu0 %1649 }
 0xec3   :  { %v1652_v7 = vadd.f32 %v1650_v50, %v1646_v52 }
 0xec5   :  { %2064 = vtanh.f32 %v1652_v7 }
 0xed0   :  { %v1714_v41 = vpop.permute.xlu1 %1713 }
 0xed1   :  { %v1716_v61 = vadd.f32 %v1714_v41, %v1710_v32 }
 0xed2   :  { %v2065_v42 = vpop.eup %2064 }
 0xed3   :  { %2066 = vtanh.f32 %v1716_v61  ;;  %v1654_v18 = vmul.f32 %v2065_v42, %v1645_v30 }
 0xed5   :  { %v1655_v26 = vpack.c.bf16 %v1654_v18, %v1654_v18 }
 0xed7   :  { %1768 = vrot.lane.b32.xlu1 %v1655_v26, %s2215_s3 }
 0xedb   :  { %1839 = vrot.lane.b32.xlu1 %v1925_v39, %s2215_s3 }
 0xee0   :  { %v2067_v38 = vpop.eup %2066 }
 0xee1   :  { %v1718_v29 = vmul.f32 %v2067_v38, %v1709_v22 }
 0xee3   :  { %v1719_v19 = vpack.c.bf16 %v1718_v29, %v1718_v29 }
 0xee5   :  { %1721 = vrot.lane.b32.xlu0 %v1719_v19, %s2215_s3 }
 0xf49   :  { %v1769_v4 = vpop.permute.xlu1 %1768 }
 0xf4a   :  { %1924 = vmatmul.mubr.msk.bf16.vlgmr.msra.gmra.mxu1 %vm335_vm3, %v1769_v4 }
 0xf4d   :  { %v1840_v48 = vpop.permute.xlu1 %1839 }
 0xf57   :  { %v1722_v12 = vpop.permute.xlu0 %1721 }
 0xf58   :  { %1923 = vmatmul.mubr.msk.bf16.vlgmr.msra.gmra.mxu0 %vm335_vm3, %v1722_v12 }
0x100a   :  { %v1807_v10 = vpop.f32.mrf.mxu1 }
0x100c   :  { %v1809_v11 = vpop.f32.mrf.mxu1 }
0x100e   :  { %v1811_v33 = vpop.f32.mrf.mxu1 }
0x1010   :  { %v1812_v40 = vpop.f32.mrf.mxu1 }
0x1018   :  { %v1760_v16 = vpop.f32.mrf.mxu0 }
0x1019   :  { %v1808_v20 = vadd.f32 %v1807_v10, %v1760_v16 }
0x101a   :  { %v1762_v21 = vpop.f32.mrf.mxu0 }
0x101b   :  { %v1814_v47 = vadd.f32 %v1808_v20, %v2474_v8  ;;  %v1810_v34 = vadd.f32 %v1809_v11, %v1762_v21 }
0x101c   :  { %v1764_v51 = vpop.f32.mrf.mxu0 }
0x101d   :  { %v1816_v54 = vmul.f32 0.5, %v1814_v47  ;;  %v1815_v55 = vadd.f32 %v1810_v34, %v2481_v23 }
0x101e   :  { %v1765_v59 = vpop.f32.mrf.mxu0 }
0x101f   :  { %2068 = vtanh.f32 %v1816_v54  ;;  %v1817_v63 = vmul.f32 0.5, %v1815_v55 }
0x1021   :  { %2070 = vtanh.f32 %v1817_v63 }
0x102c   :  { %v2069_v0 = vpop.eup %2068 }
0x102d   :  { %v1820_v6 = vadd.f32 1.0, %v2069_v0 }
0x102e   :  { %v2071_v17 = vpop.eup %2070 }
0x102f   :  { %v1821_v1 = vmul.f32 0.5, %v1820_v6  ;;  %v1822_v8 = vadd.f32 1.0, %v2071_v17 }
0x1031   :  { %v1825_v24 = vmul.f32 %v2071_v17, %v1821_v1  ;;  %v1824_v28 = vmul.f32 %v1821_v1, %v1652_v7  ;;  %v1823_v58 = vmul.f32 0.5, %v1822_v8 }
0x1033   :  { %1827 = vrot.lane.b32.xlu0 %v1825_v24, %s2215_s3 }
0x10a5   :  { %v1828_v56 = vpop.permute.xlu0 %1827 }
0x10a6   :  { %v1830_v60 = vadd.f32 %v1828_v56, %v1824_v28 }
0x10a8   :  { %2072 = vtanh.f32 %v1830_v60 }
0x10b5   :  { %v2073_v2 = vpop.eup %2072 }
0x10b6   :  { %v1832_v23 = vmul.f32 %v2073_v2, %v1823_v58 }
0x10b8   :  { %v1842_v36 = vmul.f32 %v1840_v48, %v1832_v23 }
0x10ba   :  { %1844 = vrot.lane.b32.xlu0 %v1842_v36, %s2215_s3 }
0x112c   :  { %v1845_v3 = vpop.permute.xlu0 %1844 }
0x112d   :  { %v1847_v49 = vsel %vm335_vm3, %v1845_v3, 0.0 }
0x112e   :  { %1848 = vadd.xlane.f32.xlu1 %v1847_v49 }
0x11b7   :  { %v1849_v57 = vpop.xlane.xlu1 %1848 }
0x11b8   :  { %v1857_v13 = vadd.f32 %v1926_v9, %v1849_v57 }
0x11ba   :  { %v1858_v14 = vmul.f32 0.5, %v1857_v13 }
0x11bc   :  { %2074 = vtanh.f32 %v1858_v14 }
0x11c9   :  { %v2075_v15 = vpop.eup %2074 }
0x11ca   :  { %v1860_v25 = vadd.f32 1.0, %v2075_v15 }
0x11cc   :  { %v1861_v35 = vmul.f32 0.5, %v1860_v25 }
0x11ce   :  { %1863 = vst.msk [vmem:[%s2843_s9] sm:$0xff] %vm1862_vm4, %v1861_v35 }
0x11cf   :  { %1868 = vsyncpa [#allocation5], 1 }
0x11d0   :  { %1869 = vsyncpa [#allocation7], 1 }
0x11d1   :  { %1870 = vsyncpa [#allocation10], 1 }

</bundles_post_ra>
